<compile_context>
chip_gen: v6e
topology: v6e:2x2x1
jax: 0.10.0
libtpu: 0.0.40
codegen_flags: <defaults>
</compile_context>

<pallas_src>
import functools

import jax
import jax.numpy as jnp
from jax.experimental import pallas as pl
from jax.experimental.pallas import tpu as pltpu  # noqa: F401  (TPU backend)


# ----------------------------------------------------------------------------
# Fused kernel: bidirectional LSTM recurrence + logit head + count head.
# ----------------------------------------------------------------------------
def _bilstm_heads_kernel(x2_ref, mcat_ref, mout_ref, cmask_ref,
                         wih_ref, whh_ref, b_ref, h0_ref, c0_ref,
                         wl_ref, bl_ref, wc_ref, bc_ref,
                         logits_ref, counts_ref):
    T, B, H2 = mcat_ref.shape          # H2 = 2 * hidden (fwd | bwd concatenated)
    H = H2 // 2

    wih = wih_ref[...]                 # (2D, 8H) interleaved-gate input weights
    whh = whh_ref[...]                 # (2H, 8H) block-diagonal recurrent weights
    bias = b_ref[...]                  # (1, 8H)  combined b_ih + b_hh, both dirs

    # Hoisted input projection: independent of the recurrent state, so none of
    # these matmuls sit on the serial chain.  x2[s] = [x[s] | x[T-1-s]] feeds the
    # forward (time s) and backward (time T-1-s) halves in one 256-wide matmul.
    xps = [jnp.dot(x2_ref[s], wih, preferred_element_type=jnp.float32) + bias
           for s in range(T)]          # each (B, 8H)

    # Learned initial states, broadcast across the batch.  (The module passes
    # (c0, h0) as the LSTM's (h_0, c_0) tuple; that swap is baked into params.)
    h = jnp.broadcast_to(h0_ref[...], (B, H2))     # [h_fwd | h_bwd]
    c = jnp.broadcast_to(c0_ref[...], (B, H2))     # [c_fwd | c_bwd]

    outs_f = []                        # fwd hidden at time s
    outs_b = []                        # bwd hidden at time T-1-s

    # Fully unrolled recurrence: one fused MXU call per step for both
    # directions and all 4 gates.  Gate layout: [i_f i_b | f_f f_b | g_f g_b | o_f o_b].
    for s in range(T):
        gates = xps[s] + jnp.dot(h, whh, preferred_element_type=jnp.float32)  # (B, 8H)
        i_g = jax.nn.sigmoid(gates[:, 0 * H2:1 * H2])
        f_g = jax.nn.sigmoid(gates[:, 1 * H2:2 * H2])
        g_g = jnp.tanh(gates[:, 2 * H2:3 * H2])
        o_g = jax.nn.sigmoid(gates[:, 3 * H2:4 * H2])
        c_new = f_g * c + i_g * g_g
        h_new = o_g * jnp.tanh(c_new)

        # Packed-sequence gating: fwd half masked by (s < len), bwd half by
        # (T-1-s < len).  Multiplicative blend (mask is exactly 0/1).
        m = mcat_ref[s]                                   # (B, 2H)
        h = m * h_new + (1.0 - m) * h
        c = m * c_new + (1.0 - m) * c

        outs_f.append(h_new[:, :H])                       # raw; output mask applied below
        outs_b.append(h_new[:, H:])

    # Fused heads.  osum[t] = (h_fwd[t] + h_bwd[t]) zeroed for t >= len
    # (pad_packed_sequence semantics); logit head per timestep, count head on
    # the cmask-weighted sum (masked mean with the original's `lens[i]`).
    wl = wl_ref[...]
    bl = bl_ref[...]
    pc = jnp.zeros((B, H), jnp.float32)
    for t in range(T):
        o_t = (outs_f[t] + outs_b[T - 1 - t]) * mout_ref[t]          # (B, H)
        logits_ref[t] = (jnp.dot(o_t, wl, preferred_element_type=jnp.float32)
                         + bl)
        pc = pc + cmask_ref[t] * o_t
    counts_ref[...] = (jnp.dot(pc, wc_ref[...], preferred_element_type=jnp.float32)
                       + bc_ref[...])


# ----------------------------------------------------------------------------
# Forward pass (glue: length inference, sorting, mask construction, permutes).
# ----------------------------------------------------------------------------
def rnn_forward(params, inputs, lens=None):
    T, B, D = inputs.shape
    H = params["h0_cat"].shape[1] // 2

    if lens is None:
        # NOTE: inherited from the original module — a valid timestep that is
        # exactly all-zero silently shortens the inferred length.
        lens = jnp.sum(jnp.any(inputs != 0, axis=2), axis=0).astype(jnp.int32)

    # Stable descending sort by length (the original's np.argsort+flip has
    # unspecified tie order; a deterministic stable descending order is used).
    order = jnp.argsort(-lens)
    lens_sorted = lens[order]
    x_sorted = inputs[:, order, :]

    # Faithful reproduction of the module's re-ordering: order_r = order[order].
    order_r = order[order]
    inv_order_r = jnp.argsort(order_r)          # permutation inverse
    lens_count = lens[inv_order_r]              # length used for column j's count mean

    t_idx = jnp.arange(T, dtype=jnp.int32)
    mask = (t_idx[:, None] < lens_sorted[None, :]).astype(jnp.float32)   # (T, B)

    # State-gating mask for the interleaved loop: fwd half at time t,
    # bwd half at time T-1-t.
    mcat = jnp.concatenate(
        [jnp.broadcast_to(mask[:, :, None], (T, B, H)),
         jnp.broadcast_to(mask[::-1, :, None], (T, B, H))], axis=-1)     # (T, B, 2H)
    mout = mask[:, :, None]                                              # (T, B, 1)

    # Count mask: (t < lens_count[j]) / lens_count[j]; max(.,1) guards the
    # zero-length NaN the original would produce (it would crash upstream anyway).
    cmask = ((t_idx[:, None] < lens_count[None, :]).astype(jnp.float32)
             / jnp.maximum(lens_count, 1).astype(jnp.float32)[None, :])[:, :, None]

    # Per-step features for both directions: [x[t] | x[T-1-t]].
    x2 = jnp.concatenate([x_sorted, x_sorted[::-1]], axis=-1)            # (T, B, 2D)

    # TODO(synk): like pad_packed_sequence, the output time length is assumed
    # to be T (i.e. max(lens) == T); dynamic max-length truncation has no
    # static-shape Pallas equivalent.
    logits_cols, counts_cols = pl.pallas_call(
        _bilstm_heads_kernel,
        out_shape=(jax.ShapeDtypeStruct((T, B, 2), jnp.float32),
                   jax.ShapeDtypeStruct((B, 2), jnp.float32)),
    )(x2, mcat, mout, cmask,
      params["wih_bd"], params["whh_bd"], params["b_cat"],
      params["h0_cat"], params["c0_cat"],
      params["wl_t"], params["bl"], params["wc_t"], params["bc"])

    # Apply the batch permutation to the small head outputs (not the (T,B,H)
    # prelogits) — the heads are linear/per-row so this commutes exactly.
    logits = jnp.transpose(logits_cols[:, order_r, :], (1, 0, 2))        # (B, T, 2)
    counts = counts_cols[order_r]                                        # (B, 2)
    return logits, counts


# ----------------------------------------------------------------------------
# Deterministic parameter init (shapes match the PyTorch module) + repacking.
# ----------------------------------------------------------------------------
def init_params(key, input_size, hidden_size):
    D, H = input_size, hidden_size
    ks = jax.random.split(key, 14)
    s = 1.0 / jnp.sqrt(jnp.float32(H))

    def u(k, shape):
        return jax.random.uniform(k, shape, jnp.float32, -s, s)

    # nn.LSTM parameters (gate order i, f, g, o), forward and reverse directions.
    w_ih_f = u(ks[0], (4 * H, D)); w_hh_f = u(ks[1], (4 * H, H))
    b_ih_f = u(ks[2], (4 * H,));   b_hh_f = u(ks[3], (4 * H,))
    w_ih_b = u(ks[4], (4 * H, D)); w_hh_b = u(ks[5], (4 * H, H))
    b_ih_b = u(ks[6], (4 * H,));   b_hh_b = u(ks[7], (4 * H,))
    # heads
    wl = u(ks[8], (2, H)); bl = u(ks[9], (2,))
    wc = u(ks[10], (2, H)); bc = u(ks[11], (2,))
    # learned initial states (torch.randn)
    c0 = jax.random.normal(ks[12], (2, 1, H), jnp.float32)
    h0 = jax.random.normal(ks[13], (2, 1, H), jnp.float32)

    def interleave(a_f, a_b):
        # a_f, a_b: (rows, 4H) with gate-major column blocks [i, f, g, o]
        # -> (rows, 8H) with columns [i_f, i_b, f_f, f_b, g_f, g_b, o_f, o_b].
        parts = []
        for k in range(4):
            parts.append(a_f[:, k * H:(k + 1) * H])
            parts.append(a_b[:, k * H:(k + 1) * H])
        return jnp.concatenate(parts, axis=1)

    zD = jnp.zeros((D, 4 * H), jnp.float32)
    zH = jnp.zeros((H, 4 * H), jnp.float32)
    # Block structure: top rows feed the forward gates, bottom rows the
    # backward gates (zeros elsewhere) -> one matmul drives both directions.
    wih_bd = jnp.concatenate(
        [interleave(w_ih_f.T, zD), interleave(zD, w_ih_b.T)], axis=0)   # (2D, 8H)
    whh_bd = jnp.concatenate(
        [interleave(w_hh_f.T, zH), interleave(zH, w_hh_b.T)], axis=0)   # (2H, 8H)
    b_cat = interleave((b_ih_f + b_hh_f)[None, :],
                       (b_ih_b + b_hh_b)[None, :])                      # (1, 8H)

    # The module passes (c0, h0) as the LSTM's (h_0, c_0) tuple; replicate that
    # swap exactly: h-init comes from the parameter named c0 and vice versa.
    h0_cat = jnp.concatenate([c0[0], c0[1]], axis=-1)                   # (1, 2H)
    c0_cat = jnp.concatenate([h0[0], h0[1]], axis=-1)                   # (1, 2H)

    return dict(
        wih_bd=wih_bd, whh_bd=whh_bd, b_cat=b_cat,
        h0_cat=h0_cat, c0_cat=c0_cat,
        wl_t=wl.T, bl=bl.reshape(1, 2),
        wc_t=wc.T, bc=bc.reshape(1, 2),
    )


if __name__ == "__main__":
    T, B, D, H = 8, 4, 16, 32
    key = jax.random.PRNGKey(0)
    kp, kx = jax.random.split(key)

    params = init_params(kp, D, H)

    # Ragged inputs: zero-padded tails so the forward's length inference
    # (inputs.any(2).sum(0)) recovers these lengths.  max(len) == T.
    lens = jnp.array([8, 5, 7, 3], dtype=jnp.int32)
    x = jax.random.normal(kx, (T, B, D), jnp.float32)
    valid = (jnp.arange(T)[:, None] < lens[None, :]).astype(jnp.float32)[:, :, None]
    x = x * valid

    fwd = jax.jit(functools.partial(rnn_forward, params))
    logits, counts = fwd(x)
    jax.block_until_ready((logits, counts))

    assert logits.shape == (B, T, 2)
    assert counts.shape == (B, 2)
    assert bool(jnp.all(jnp.isfinite(logits))) and bool(jnp.all(jnp.isfinite(counts)))
    print("KERNEL_OK")
</pallas_src>

<mosaic_0001>
module attributes {stable_mosaic.version = 11 : i64} {
  func.func @_bilstm_heads_kernel(%arg0: memref<8x4x32xf32, #tpu.memory_space<vmem>>, %arg1: memref<8x4x64xf32, #tpu.memory_space<vmem>>, %arg2: memref<8x4x1xf32, #tpu.memory_space<vmem>>, %arg3: memref<8x4x1xf32, #tpu.memory_space<vmem>>, %arg4: memref<32x256xf32, #tpu.memory_space<vmem>>, %arg5: memref<64x256xf32, #tpu.memory_space<vmem>>, %arg6: memref<1x256xf32, #tpu.memory_space<vmem>>, %arg7: memref<1x64xf32, #tpu.memory_space<vmem>>, %arg8: memref<1x64xf32, #tpu.memory_space<vmem>>, %arg9: memref<32x2xf32, #tpu.memory_space<vmem>>, %arg10: memref<1x2xf32, #tpu.memory_space<vmem>>, %arg11: memref<32x2xf32, #tpu.memory_space<vmem>>, %arg12: memref<1x2xf32, #tpu.memory_space<vmem>>, %arg13: memref<8x4x2xf32, #tpu.memory_space<vmem>>, %arg14: memref<4x2xf32, #tpu.memory_space<vmem>>) attributes {dimension_semantics = [], scalar_prefetch = 0 : i64, scratch_operands = 0 : i64, tpu.core_type = #tpu.core_type<tc>} {
    %c0 = arith.constant 0 : index
    %c0_0 = arith.constant 0 : index
    %0 = vector.load %arg4[%c0, %c0_0] : memref<32x256xf32, #tpu.memory_space<vmem>>, vector<32x256xf32>
    %c0_1 = arith.constant 0 : index
    %c0_2 = arith.constant 0 : index
    %1 = vector.load %arg5[%c0_1, %c0_2] : memref<64x256xf32, #tpu.memory_space<vmem>>, vector<64x256xf32>
    %c0_3 = arith.constant 0 : index
    %c0_4 = arith.constant 0 : index
    %2 = vector.load %arg6[%c0_3, %c0_4] : memref<1x256xf32, #tpu.memory_space<vmem>>, vector<1x256xf32>
    %c0_5 = arith.constant 0 : index
    %c0_6 = arith.constant 0 : index
    %c0_7 = arith.constant 0 : index
    %3 = vector.load %arg0[%c0_5, %c0_6, %c0_7] : memref<8x4x32xf32, #tpu.memory_space<vmem>>, vector<1x4x32xf32>
    %4 = vector.shape_cast %3 : vector<1x4x32xf32> to vector<4x32xf32>
    %cst = arith.constant dense<0.000000e+00> : vector<4x256xf32>
    %5 = tpu.matmul %4, %0, %cst {dimension_numbers = #tpu.dot_dimension_numbers<[1], [0], [0], [1], [0, 0, 1, 1], [], []>} : vector<4x32xf32>, vector<32x256xf32>, vector<4x256xf32> -> vector<4x256xf32>
    %6 = vector.broadcast %2 : vector<1x256xf32> to vector<4x256xf32>
    %7 = arith.addf %5, %6 : vector<4x256xf32>
    %c1 = arith.constant 1 : index
    %c0_8 = arith.constant 0 : index
    %c0_9 = arith.constant 0 : index
    %8 = vector.load %arg0[%c1, %c0_8, %c0_9] : memref<8x4x32xf32, #tpu.memory_space<vmem>>, vector<1x4x32xf32>
    %9 = vector.shape_cast %8 : vector<1x4x32xf32> to vector<4x32xf32>
    %cst_10 = arith.constant dense<0.000000e+00> : vector<4x256xf32>
    %10 = tpu.matmul %9, %0, %cst_10 {dimension_numbers = #tpu.dot_dimension_numbers<[1], [0], [0], [1], [0, 0, 1, 1], [], []>} : vector<4x32xf32>, vector<32x256xf32>, vector<4x256xf32> -> vector<4x256xf32>
    %11 = vector.broadcast %2 : vector<1x256xf32> to vector<4x256xf32>
    %12 = arith.addf %10, %11 : vector<4x256xf32>
    %c2 = arith.constant 2 : index
    %c0_11 = arith.constant 0 : index
    %c0_12 = arith.constant 0 : index
    %13 = vector.load %arg0[%c2, %c0_11, %c0_12] : memref<8x4x32xf32, #tpu.memory_space<vmem>>, vector<1x4x32xf32>
    %14 = vector.shape_cast %13 : vector<1x4x32xf32> to vector<4x32xf32>
    %cst_13 = arith.constant dense<0.000000e+00> : vector<4x256xf32>
    %15 = tpu.matmul %14, %0, %cst_13 {dimension_numbers = #tpu.dot_dimension_numbers<[1], [0], [0], [1], [0, 0, 1, 1], [], []>} : vector<4x32xf32>, vector<32x256xf32>, vector<4x256xf32> -> vector<4x256xf32>
    %16 = vector.broadcast %2 : vector<1x256xf32> to vector<4x256xf32>
    %17 = arith.addf %15, %16 : vector<4x256xf32>
    %c3 = arith.constant 3 : index
    %c0_14 = arith.constant 0 : index
    %c0_15 = arith.constant 0 : index
    %18 = vector.load %arg0[%c3, %c0_14, %c0_15] : memref<8x4x32xf32, #tpu.memory_space<vmem>>, vector<1x4x32xf32>
    %19 = vector.shape_cast %18 : vector<1x4x32xf32> to vector<4x32xf32>
    %cst_16 = arith.constant dense<0.000000e+00> : vector<4x256xf32>
    %20 = tpu.matmul %19, %0, %cst_16 {dimension_numbers = #tpu.dot_dimension_numbers<[1], [0], [0], [1], [0, 0, 1, 1], [], []>} : vector<4x32xf32>, vector<32x256xf32>, vector<4x256xf32> -> vector<4x256xf32>
    %21 = vector.broadcast %2 : vector<1x256xf32> to vector<4x256xf32>
    %22 = arith.addf %20, %21 : vector<4x256xf32>
    %c4 = arith.constant 4 : index
    %c0_17 = arith.constant 0 : index
    %c0_18 = arith.constant 0 : index
    %23 = vector.load %arg0[%c4, %c0_17, %c0_18] : memref<8x4x32xf32, #tpu.memory_space<vmem>>, vector<1x4x32xf32>
    %24 = vector.shape_cast %23 : vector<1x4x32xf32> to vector<4x32xf32>
    %cst_19 = arith.constant dense<0.000000e+00> : vector<4x256xf32>
    %25 = tpu.matmul %24, %0, %cst_19 {dimension_numbers = #tpu.dot_dimension_numbers<[1], [0], [0], [1], [0, 0, 1, 1], [], []>} : vector<4x32xf32>, vector<32x256xf32>, vector<4x256xf32> -> vector<4x256xf32>
    %26 = vector.broadcast %2 : vector<1x256xf32> to vector<4x256xf32>
    %27 = arith.addf %25, %26 : vector<4x256xf32>
    %c5 = arith.constant 5 : index
    %c0_20 = arith.constant 0 : index
    %c0_21 = arith.constant 0 : index
    %28 = vector.load %arg0[%c5, %c0_20, %c0_21] : memref<8x4x32xf32, #tpu.memory_space<vmem>>, vector<1x4x32xf32>
    %29 = vector.shape_cast %28 : vector<1x4x32xf32> to vector<4x32xf32>
    %cst_22 = arith.constant dense<0.000000e+00> : vector<4x256xf32>
    %30 = tpu.matmul %29, %0, %cst_22 {dimension_numbers = #tpu.dot_dimension_numbers<[1], [0], [0], [1], [0, 0, 1, 1], [], []>} : vector<4x32xf32>, vector<32x256xf32>, vector<4x256xf32> -> vector<4x256xf32>
    %31 = vector.broadcast %2 : vector<1x256xf32> to vector<4x256xf32>
    %32 = arith.addf %30, %31 : vector<4x256xf32>
    %c6 = arith.constant 6 : index
    %c0_23 = arith.constant 0 : index
    %c0_24 = arith.constant 0 : index
    %33 = vector.load %arg0[%c6, %c0_23, %c0_24] : memref<8x4x32xf32, #tpu.memory_space<vmem>>, vector<1x4x32xf32>
    %34 = vector.shape_cast %33 : vector<1x4x32xf32> to vector<4x32xf32>
    %cst_25 = arith.constant dense<0.000000e+00> : vector<4x256xf32>
    %35 = tpu.matmul %34, %0, %cst_25 {dimension_numbers = #tpu.dot_dimension_numbers<[1], [0], [0], [1], [0, 0, 1, 1], [], []>} : vector<4x32xf32>, vector<32x256xf32>, vector<4x256xf32> -> vector<4x256xf32>
    %36 = vector.broadcast %2 : vector<1x256xf32> to vector<4x256xf32>
    %37 = arith.addf %35, %36 : vector<4x256xf32>
    %c7 = arith.constant 7 : index
    %c0_26 = arith.constant 0 : index
    %c0_27 = arith.constant 0 : index
    %38 = vector.load %arg0[%c7, %c0_26, %c0_27] : memref<8x4x32xf32, #tpu.memory_space<vmem>>, vector<1x4x32xf32>
    %39 = vector.shape_cast %38 : vector<1x4x32xf32> to vector<4x32xf32>
    %cst_28 = arith.constant dense<0.000000e+00> : vector<4x256xf32>
    %40 = tpu.matmul %39, %0, %cst_28 {dimension_numbers = #tpu.dot_dimension_numbers<[1], [0], [0], [1], [0, 0, 1, 1], [], []>} : vector<4x32xf32>, vector<32x256xf32>, vector<4x256xf32> -> vector<4x256xf32>
    %41 = vector.broadcast %2 : vector<1x256xf32> to vector<4x256xf32>
    %42 = arith.addf %40, %41 : vector<4x256xf32>
    %c0_29 = arith.constant 0 : index
    %c0_30 = arith.constant 0 : index
    %43 = vector.load %arg7[%c0_29, %c0_30] : memref<1x64xf32, #tpu.memory_space<vmem>>, vector<1x64xf32>
    %44 = vector.shape_cast %43 : vector<1x64xf32> to vector<1x64xf32>
    %45 = vector.broadcast %44 : vector<1x64xf32> to vector<4x64xf32>
    %c0_31 = arith.constant 0 : index
    %c0_32 = arith.constant 0 : index
    %46 = vector.load %arg8[%c0_31, %c0_32] : memref<1x64xf32, #tpu.memory_space<vmem>>, vector<1x64xf32>
    %47 = vector.shape_cast %46 : vector<1x64xf32> to vector<1x64xf32>
    %48 = vector.broadcast %47 : vector<1x64xf32> to vector<4x64xf32>
    %cst_33 = arith.constant dense<0.000000e+00> : vector<4x256xf32>
    %49 = tpu.matmul %45, %1, %cst_33 {dimension_numbers = #tpu.dot_dimension_numbers<[1], [0], [0], [1], [0, 0, 1, 1], [], []>} : vector<4x64xf32>, vector<64x256xf32>, vector<4x256xf32> -> vector<4x256xf32>
    %50 = arith.addf %7, %49 : vector<4x256xf32>
    %51 = vector.extract_strided_slice %50 {offsets = [0, 0], sizes = [4, 64], strides = [1, 1]} : vector<4x256xf32> to vector<4x64xf32>
    %52 = arith.negf %51 : vector<4x64xf32>
    %53 = math.exp %52 : vector<4x64xf32>
    %cst_34 = arith.constant 1.000000e+00 : f32
    %54 = vector.broadcast %cst_34 : f32 to vector<4x64xf32>
    %55 = arith.addf %54, %53 : vector<4x64xf32>
    %56 = arith.divf %54, %55 : vector<4x64xf32>
    %57 = vector.extract_strided_slice %50 {offsets = [0, 64], sizes = [4, 64], strides = [1, 1]} : vector<4x256xf32> to vector<4x64xf32>
    %58 = arith.negf %57 : vector<4x64xf32>
    %59 = math.exp %58 : vector<4x64xf32>
    %cst_35 = arith.constant 1.000000e+00 : f32
    %60 = vector.broadcast %cst_35 : f32 to vector<4x64xf32>
    %61 = arith.addf %60, %59 : vector<4x64xf32>
    %62 = arith.divf %60, %61 : vector<4x64xf32>
    %63 = vector.extract_strided_slice %50 {offsets = [0, 128], sizes = [4, 64], strides = [1, 1]} : vector<4x256xf32> to vector<4x64xf32>
    %64 = math.tanh %63 : vector<4x64xf32>
    %65 = vector.extract_strided_slice %50 {offsets = [0, 192], sizes = [4, 64], strides = [1, 1]} : vector<4x256xf32> to vector<4x64xf32>
    %66 = arith.negf %65 : vector<4x64xf32>
    %67 = math.exp %66 : vector<4x64xf32>
    %cst_36 = arith.constant 1.000000e+00 : f32
    %68 = vector.broadcast %cst_36 : f32 to vector<4x64xf32>
    %69 = arith.addf %68, %67 : vector<4x64xf32>
    %70 = arith.divf %68, %69 : vector<4x64xf32>
    %71 = arith.mulf %62, %48 : vector<4x64xf32>
    %72 = arith.mulf %56, %64 : vector<4x64xf32>
    %73 = arith.addf %71, %72 : vector<4x64xf32>
    %74 = math.tanh %73 : vector<4x64xf32>
    %75 = arith.mulf %70, %74 : vector<4x64xf32>
    %c0_37 = arith.constant 0 : index
    %c0_38 = arith.constant 0 : index
    %c0_39 = arith.constant 0 : index
    %76 = vector.load %arg1[%c0_37, %c0_38, %c0_39] : memref<8x4x64xf32, #tpu.memory_space<vmem>>, vector<1x4x64xf32>
    %77 = vector.shape_cast %76 : vector<1x4x64xf32> to vector<4x64xf32>
    %78 = arith.mulf %77, %75 : vector<4x64xf32>
    %cst_40 = arith.constant 1.000000e+00 : f32
    %79 = vector.broadcast %cst_40 : f32 to vector<4x64xf32>
    %80 = arith.subf %79, %77 : vector<4x64xf32>
    %81 = arith.mulf %80, %45 : vector<4x64xf32>
    %82 = arith.addf %78, %81 : vector<4x64xf32>
    %83 = arith.mulf %77, %73 : vector<4x64xf32>
    %cst_41 = arith.constant 1.000000e+00 : f32
    %84 = vector.broadcast %cst_41 : f32 to vector<4x64xf32>
    %85 = arith.subf %84, %77 : vector<4x64xf32>
    %86 = arith.mulf %85, %48 : vector<4x64xf32>
    %87 = arith.addf %83, %86 : vector<4x64xf32>
    %88 = vector.extract_strided_slice %75 {offsets = [0, 0], sizes = [4, 32], strides = [1, 1]} : vector<4x64xf32> to vector<4x32xf32>
    %89 = vector.extract_strided_slice %75 {offsets = [0, 32], sizes = [4, 32], strides = [1, 1]} : vector<4x64xf32> to vector<4x32xf32>
    %cst_42 = arith.constant dense<0.000000e+00> : vector<4x256xf32>
    %90 = tpu.matmul %82, %1, %cst_42 {dimension_numbers = #tpu.dot_dimension_numbers<[1], [0], [0], [1], [0, 0, 1, 1], [], []>} : vector<4x64xf32>, vector<64x256xf32>, vector<4x256xf32> -> vector<4x256xf32>
    %91 = arith.addf %12, %90 : vector<4x256xf32>
    %92 = vector.extract_strided_slice %91 {offsets = [0, 0], sizes = [4, 64], strides = [1, 1]} : vector<4x256xf32> to vector<4x64xf32>
    %93 = arith.negf %92 : vector<4x64xf32>
    %94 = math.exp %93 : vector<4x64xf32>
    %cst_43 = arith.constant 1.000000e+00 : f32
    %95 = vector.broadcast %cst_43 : f32 to vector<4x64xf32>
    %96 = arith.addf %95, %94 : vector<4x64xf32>
    %97 = arith.divf %95, %96 : vector<4x64xf32>
    %98 = vector.extract_strided_slice %91 {offsets = [0, 64], sizes = [4, 64], strides = [1, 1]} : vector<4x256xf32> to vector<4x64xf32>
    %99 = arith.negf %98 : vector<4x64xf32>
    %100 = math.exp %99 : vector<4x64xf32>
    %cst_44 = arith.constant 1.000000e+00 : f32
    %101 = vector.broadcast %cst_44 : f32 to vector<4x64xf32>
    %102 = arith.addf %101, %100 : vector<4x64xf32>
    %103 = arith.divf %101, %102 : vector<4x64xf32>
    %104 = vector.extract_strided_slice %91 {offsets = [0, 128], sizes = [4, 64], strides = [1, 1]} : vector<4x256xf32> to vector<4x64xf32>
    %105 = math.tanh %104 : vector<4x64xf32>
    %106 = vector.extract_strided_slice %91 {offsets = [0, 192], sizes = [4, 64], strides = [1, 1]} : vector<4x256xf32> to vector<4x64xf32>
    %107 = arith.negf %106 : vector<4x64xf32>
    %108 = math.exp %107 : vector<4x64xf32>
    %cst_45 = arith.constant 1.000000e+00 : f32
    %109 = vector.broadcast %cst_45 : f32 to vector<4x64xf32>
    %110 = arith.addf %109, %108 : vector<4x64xf32>
    %111 = arith.divf %109, %110 : vector<4x64xf32>
    %112 = arith.mulf %103, %87 : vector<4x64xf32>
    %113 = arith.mulf %97, %105 : vector<4x64xf32>
    %114 = arith.addf %112, %113 : vector<4x64xf32>
    %115 = math.tanh %114 : vector<4x64xf32>
    %116 = arith.mulf %111, %115 : vector<4x64xf32>
    %c1_46 = arith.constant 1 : index
    %c0_47 = arith.constant 0 : index
    %c0_48 = arith.constant 0 : index
    %117 = vector.load %arg1[%c1_46, %c0_47, %c0_48] : memref<8x4x64xf32, #tpu.memory_space<vmem>>, vector<1x4x64xf32>
    %118 = vector.shape_cast %117 : vector<1x4x64xf32> to vector<4x64xf32>
    %119 = arith.mulf %118, %116 : vector<4x64xf32>
    %cst_49 = arith.constant 1.000000e+00 : f32
    %120 = vector.broadcast %cst_49 : f32 to vector<4x64xf32>
    %121 = arith.subf %120, %118 : vector<4x64xf32>
    %122 = arith.mulf %121, %82 : vector<4x64xf32>
    %123 = arith.addf %119, %122 : vector<4x64xf32>
    %124 = arith.mulf %118, %114 : vector<4x64xf32>
    %cst_50 = arith.constant 1.000000e+00 : f32
    %125 = vector.broadcast %cst_50 : f32 to vector<4x64xf32>
    %126 = arith.subf %125, %118 : vector<4x64xf32>
    %127 = arith.mulf %126, %87 : vector<4x64xf32>
    %128 = arith.addf %124, %127 : vector<4x64xf32>
    %129 = vector.extract_strided_slice %116 {offsets = [0, 0], sizes = [4, 32], strides = [1, 1]} : vector<4x64xf32> to vector<4x32xf32>
    %130 = vector.extract_strided_slice %116 {offsets = [0, 32], sizes = [4, 32], strides = [1, 1]} : vector<4x64xf32> to vector<4x32xf32>
    %cst_51 = arith.constant dense<0.000000e+00> : vector<4x256xf32>
    %131 = tpu.matmul %123, %1, %cst_51 {dimension_numbers = #tpu.dot_dimension_numbers<[1], [0], [0], [1], [0, 0, 1, 1], [], []>} : vector<4x64xf32>, vector<64x256xf32>, vector<4x256xf32> -> vector<4x256xf32>
    %132 = arith.addf %17, %131 : vector<4x256xf32>
    %133 = vector.extract_strided_slice %132 {offsets = [0, 0], sizes = [4, 64], strides = [1, 1]} : vector<4x256xf32> to vector<4x64xf32>
    %134 = arith.negf %133 : vector<4x64xf32>
    %135 = math.exp %134 : vector<4x64xf32>
    %cst_52 = arith.constant 1.000000e+00 : f32
    %136 = vector.broadcast %cst_52 : f32 to vector<4x64xf32>
    %137 = arith.addf %136, %135 : vector<4x64xf32>
    %138 = arith.divf %136, %137 : vector<4x64xf32>
    %139 = vector.extract_strided_slice %132 {offsets = [0, 64], sizes = [4, 64], strides = [1, 1]} : vector<4x256xf32> to vector<4x64xf32>
    %140 = arith.negf %139 : vector<4x64xf32>
    %141 = math.exp %140 : vector<4x64xf32>
    %cst_53 = arith.constant 1.000000e+00 : f32
    %142 = vector.broadcast %cst_53 : f32 to vector<4x64xf32>
    %143 = arith.addf %142, %141 : vector<4x64xf32>
    %144 = arith.divf %142, %143 : vector<4x64xf32>
    %145 = vector.extract_strided_slice %132 {offsets = [0, 128], sizes = [4, 64], strides = [1, 1]} : vector<4x256xf32> to vector<4x64xf32>
    %146 = math.tanh %145 : vector<4x64xf32>
    %147 = vector.extract_strided_slice %132 {offsets = [0, 192], sizes = [4, 64], strides = [1, 1]} : vector<4x256xf32> to vector<4x64xf32>
    %148 = arith.negf %147 : vector<4x64xf32>
    %149 = math.exp %148 : vector<4x64xf32>
    %cst_54 = arith.constant 1.000000e+00 : f32
    %150 = vector.broadcast %cst_54 : f32 to vector<4x64xf32>
    %151 = arith.addf %150, %149 : vector<4x64xf32>
    %152 = arith.divf %150, %151 : vector<4x64xf32>
    %153 = arith.mulf %144, %128 : vector<4x64xf32>
    %154 = arith.mulf %138, %146 : vector<4x64xf32>
    %155 = arith.addf %153, %154 : vector<4x64xf32>
    %156 = math.tanh %155 : vector<4x64xf32>
    %157 = arith.mulf %152, %156 : vector<4x64xf32>
    %c2_55 = arith.constant 2 : index
    %c0_56 = arith.constant 0 : index
    %c0_57 = arith.constant 0 : index
    %158 = vector.load %arg1[%c2_55, %c0_56, %c0_57] : memref<8x4x64xf32, #tpu.memory_space<vmem>>, vector<1x4x64xf32>
    %159 = vector.shape_cast %158 : vector<1x4x64xf32> to vector<4x64xf32>
    %160 = arith.mulf %159, %157 : vector<4x64xf32>
    %cst_58 = arith.constant 1.000000e+00 : f32
    %161 = vector.broadcast %cst_58 : f32 to vector<4x64xf32>
    %162 = arith.subf %161, %159 : vector<4x64xf32>
    %163 = arith.mulf %162, %123 : vector<4x64xf32>
    %164 = arith.addf %160, %163 : vector<4x64xf32>
    %165 = arith.mulf %159, %155 : vector<4x64xf32>
    %cst_59 = arith.constant 1.000000e+00 : f32
    %166 = vector.broadcast %cst_59 : f32 to vector<4x64xf32>
    %167 = arith.subf %166, %159 : vector<4x64xf32>
    %168 = arith.mulf %167, %128 : vector<4x64xf32>
    %169 = arith.addf %165, %168 : vector<4x64xf32>
    %170 = vector.extract_strided_slice %157 {offsets = [0, 0], sizes = [4, 32], strides = [1, 1]} : vector<4x64xf32> to vector<4x32xf32>
    %171 = vector.extract_strided_slice %157 {offsets = [0, 32], sizes = [4, 32], strides = [1, 1]} : vector<4x64xf32> to vector<4x32xf32>
    %cst_60 = arith.constant dense<0.000000e+00> : vector<4x256xf32>
    %172 = tpu.matmul %164, %1, %cst_60 {dimension_numbers = #tpu.dot_dimension_numbers<[1], [0], [0], [1], [0, 0, 1, 1], [], []>} : vector<4x64xf32>, vector<64x256xf32>, vector<4x256xf32> -> vector<4x256xf32>
    %173 = arith.addf %22, %172 : vector<4x256xf32>
    %174 = vector.extract_strided_slice %173 {offsets = [0, 0], sizes = [4, 64], strides = [1, 1]} : vector<4x256xf32> to vector<4x64xf32>
    %175 = arith.negf %174 : vector<4x64xf32>
    %176 = math.exp %175 : vector<4x64xf32>
    %cst_61 = arith.constant 1.000000e+00 : f32
    %177 = vector.broadcast %cst_61 : f32 to vector<4x64xf32>
    %178 = arith.addf %177, %176 : vector<4x64xf32>
    %179 = arith.divf %177, %178 : vector<4x64xf32>
    %180 = vector.extract_strided_slice %173 {offsets = [0, 64], sizes = [4, 64], strides = [1, 1]} : vector<4x256xf32> to vector<4x64xf32>
    %181 = arith.negf %180 : vector<4x64xf32>
    %182 = math.exp %181 : vector<4x64xf32>
    %cst_62 = arith.constant 1.000000e+00 : f32
    %183 = vector.broadcast %cst_62 : f32 to vector<4x64xf32>
    %184 = arith.addf %183, %182 : vector<4x64xf32>
    %185 = arith.divf %183, %184 : vector<4x64xf32>
    %186 = vector.extract_strided_slice %173 {offsets = [0, 128], sizes = [4, 64], strides = [1, 1]} : vector<4x256xf32> to vector<4x64xf32>
    %187 = math.tanh %186 : vector<4x64xf32>
    %188 = vector.extract_strided_slice %173 {offsets = [0, 192], sizes = [4, 64], strides = [1, 1]} : vector<4x256xf32> to vector<4x64xf32>
    %189 = arith.negf %188 : vector<4x64xf32>
    %190 = math.exp %189 : vector<4x64xf32>
    %cst_63 = arith.constant 1.000000e+00 : f32
    %191 = vector.broadcast %cst_63 : f32 to vector<4x64xf32>
    %192 = arith.addf %191, %190 : vector<4x64xf32>
    %193 = arith.divf %191, %192 : vector<4x64xf32>
    %194 = arith.mulf %185, %169 : vector<4x64xf32>
    %195 = arith.mulf %179, %187 : vector<4x64xf32>
    %196 = arith.addf %194, %195 : vector<4x64xf32>
    %197 = math.tanh %196 : vector<4x64xf32>
    %198 = arith.mulf %193, %197 : vector<4x64xf32>
    %c3_64 = arith.constant 3 : index
    %c0_65 = arith.constant 0 : index
    %c0_66 = arith.constant 0 : index
    %199 = vector.load %arg1[%c3_64, %c0_65, %c0_66] : memref<8x4x64xf32, #tpu.memory_space<vmem>>, vector<1x4x64xf32>
    %200 = vector.shape_cast %199 : vector<1x4x64xf32> to vector<4x64xf32>
    %201 = arith.mulf %200, %198 : vector<4x64xf32>
    %cst_67 = arith.constant 1.000000e+00 : f32
    %202 = vector.broadcast %cst_67 : f32 to vector<4x64xf32>
    %203 = arith.subf %202, %200 : vector<4x64xf32>
    %204 = arith.mulf %203, %164 : vector<4x64xf32>
    %205 = arith.addf %201, %204 : vector<4x64xf32>
    %206 = arith.mulf %200, %196 : vector<4x64xf32>
    %cst_68 = arith.constant 1.000000e+00 : f32
    %207 = vector.broadcast %cst_68 : f32 to vector<4x64xf32>
    %208 = arith.subf %207, %200 : vector<4x64xf32>
    %209 = arith.mulf %208, %169 : vector<4x64xf32>
    %210 = arith.addf %206, %209 : vector<4x64xf32>
    %211 = vector.extract_strided_slice %198 {offsets = [0, 0], sizes = [4, 32], strides = [1, 1]} : vector<4x64xf32> to vector<4x32xf32>
    %212 = vector.extract_strided_slice %198 {offsets = [0, 32], sizes = [4, 32], strides = [1, 1]} : vector<4x64xf32> to vector<4x32xf32>
    %cst_69 = arith.constant dense<0.000000e+00> : vector<4x256xf32>
    %213 = tpu.matmul %205, %1, %cst_69 {dimension_numbers = #tpu.dot_dimension_numbers<[1], [0], [0], [1], [0, 0, 1, 1], [], []>} : vector<4x64xf32>, vector<64x256xf32>, vector<4x256xf32> -> vector<4x256xf32>
    %214 = arith.addf %27, %213 : vector<4x256xf32>
    %215 = vector.extract_strided_slice %214 {offsets = [0, 0], sizes = [4, 64], strides = [1, 1]} : vector<4x256xf32> to vector<4x64xf32>
    %216 = arith.negf %215 : vector<4x64xf32>
    %217 = math.exp %216 : vector<4x64xf32>
    %cst_70 = arith.constant 1.000000e+00 : f32
    %218 = vector.broadcast %cst_70 : f32 to vector<4x64xf32>
    %219 = arith.addf %218, %217 : vector<4x64xf32>
    %220 = arith.divf %218, %219 : vector<4x64xf32>
    %221 = vector.extract_strided_slice %214 {offsets = [0, 64], sizes = [4, 64], strides = [1, 1]} : vector<4x256xf32> to vector<4x64xf32>
    %222 = arith.negf %221 : vector<4x64xf32>
    %223 = math.exp %222 : vector<4x64xf32>
    %cst_71 = arith.constant 1.000000e+00 : f32
    %224 = vector.broadcast %cst_71 : f32 to vector<4x64xf32>
    %225 = arith.addf %224, %223 : vector<4x64xf32>
    %226 = arith.divf %224, %225 : vector<4x64xf32>
    %227 = vector.extract_strided_slice %214 {offsets = [0, 128], sizes = [4, 64], strides = [1, 1]} : vector<4x256xf32> to vector<4x64xf32>
    %228 = math.tanh %227 : vector<4x64xf32>
    %229 = vector.extract_strided_slice %214 {offsets = [0, 192], sizes = [4, 64], strides = [1, 1]} : vector<4x256xf32> to vector<4x64xf32>
    %230 = arith.negf %229 : vector<4x64xf32>
    %231 = math.exp %230 : vector<4x64xf32>
    %cst_72 = arith.constant 1.000000e+00 : f32
    %232 = vector.broadcast %cst_72 : f32 to vector<4x64xf32>
    %233 = arith.addf %232, %231 : vector<4x64xf32>
    %234 = arith.divf %232, %233 : vector<4x64xf32>
    %235 = arith.mulf %226, %210 : vector<4x64xf32>
    %236 = arith.mulf %220, %228 : vector<4x64xf32>
    %237 = arith.addf %235, %236 : vector<4x64xf32>
    %238 = math.tanh %237 : vector<4x64xf32>
    %239 = arith.mulf %234, %238 : vector<4x64xf32>
    %c4_73 = arith.constant 4 : index
    %c0_74 = arith.constant 0 : index
    %c0_75 = arith.constant 0 : index
    %240 = vector.load %arg1[%c4_73, %c0_74, %c0_75] : memref<8x4x64xf32, #tpu.memory_space<vmem>>, vector<1x4x64xf32>
    %241 = vector.shape_cast %240 : vector<1x4x64xf32> to vector<4x64xf32>
    %242 = arith.mulf %241, %239 : vector<4x64xf32>
    %cst_76 = arith.constant 1.000000e+00 : f32
    %243 = vector.broadcast %cst_76 : f32 to vector<4x64xf32>
    %244 = arith.subf %243, %241 : vector<4x64xf32>
    %245 = arith.mulf %244, %205 : vector<4x64xf32>
    %246 = arith.addf %242, %245 : vector<4x64xf32>
    %247 = arith.mulf %241, %237 : vector<4x64xf32>
    %cst_77 = arith.constant 1.000000e+00 : f32
    %248 = vector.broadcast %cst_77 : f32 to vector<4x64xf32>
    %249 = arith.subf %248, %241 : vector<4x64xf32>
    %250 = arith.mulf %249, %210 : vector<4x64xf32>
    %251 = arith.addf %247, %250 : vector<4x64xf32>
    %252 = vector.extract_strided_slice %239 {offsets = [0, 0], sizes = [4, 32], strides = [1, 1]} : vector<4x64xf32> to vector<4x32xf32>
    %253 = vector.extract_strided_slice %239 {offsets = [0, 32], sizes = [4, 32], strides = [1, 1]} : vector<4x64xf32> to vector<4x32xf32>
    %cst_78 = arith.constant dense<0.000000e+00> : vector<4x256xf32>
    %254 = tpu.matmul %246, %1, %cst_78 {dimension_numbers = #tpu.dot_dimension_numbers<[1], [0], [0], [1], [0, 0, 1, 1], [], []>} : vector<4x64xf32>, vector<64x256xf32>, vector<4x256xf32> -> vector<4x256xf32>
    %255 = arith.addf %32, %254 : vector<4x256xf32>
    %256 = vector.extract_strided_slice %255 {offsets = [0, 0], sizes = [4, 64], strides = [1, 1]} : vector<4x256xf32> to vector<4x64xf32>
    %257 = arith.negf %256 : vector<4x64xf32>
    %258 = math.exp %257 : vector<4x64xf32>
    %cst_79 = arith.constant 1.000000e+00 : f32
    %259 = vector.broadcast %cst_79 : f32 to vector<4x64xf32>
    %260 = arith.addf %259, %258 : vector<4x64xf32>
    %261 = arith.divf %259, %260 : vector<4x64xf32>
    %262 = vector.extract_strided_slice %255 {offsets = [0, 64], sizes = [4, 64], strides = [1, 1]} : vector<4x256xf32> to vector<4x64xf32>
    %263 = arith.negf %262 : vector<4x64xf32>
    %264 = math.exp %263 : vector<4x64xf32>
    %cst_80 = arith.constant 1.000000e+00 : f32
    %265 = vector.broadcast %cst_80 : f32 to vector<4x64xf32>
    %266 = arith.addf %265, %264 : vector<4x64xf32>
    %267 = arith.divf %265, %266 : vector<4x64xf32>
    %268 = vector.extract_strided_slice %255 {offsets = [0, 128], sizes = [4, 64], strides = [1, 1]} : vector<4x256xf32> to vector<4x64xf32>
    %269 = math.tanh %268 : vector<4x64xf32>
    %270 = vector.extract_strided_slice %255 {offsets = [0, 192], sizes = [4, 64], strides = [1, 1]} : vector<4x256xf32> to vector<4x64xf32>
    %271 = arith.negf %270 : vector<4x64xf32>
    %272 = math.exp %271 : vector<4x64xf32>
    %cst_81 = arith.constant 1.000000e+00 : f32
    %273 = vector.broadcast %cst_81 : f32 to vector<4x64xf32>
    %274 = arith.addf %273, %272 : vector<4x64xf32>
    %275 = arith.divf %273, %274 : vector<4x64xf32>
    %276 = arith.mulf %267, %251 : vector<4x64xf32>
    %277 = arith.mulf %261, %269 : vector<4x64xf32>
    %278 = arith.addf %276, %277 : vector<4x64xf32>
    %279 = math.tanh %278 : vector<4x64xf32>
    %280 = arith.mulf %275, %279 : vector<4x64xf32>
    %c5_82 = arith.constant 5 : index
    %c0_83 = arith.constant 0 : index
    %c0_84 = arith.constant 0 : index
    %281 = vector.load %arg1[%c5_82, %c0_83, %c0_84] : memref<8x4x64xf32, #tpu.memory_space<vmem>>, vector<1x4x64xf32>
    %282 = vector.shape_cast %281 : vector<1x4x64xf32> to vector<4x64xf32>
    %283 = arith.mulf %282, %280 : vector<4x64xf32>
    %cst_85 = arith.constant 1.000000e+00 : f32
    %284 = vector.broadcast %cst_85 : f32 to vector<4x64xf32>
    %285 = arith.subf %284, %282 : vector<4x64xf32>
    %286 = arith.mulf %285, %246 : vector<4x64xf32>
    %287 = arith.addf %283, %286 : vector<4x64xf32>
    %288 = arith.mulf %282, %278 : vector<4x64xf32>
    %cst_86 = arith.constant 1.000000e+00 : f32
    %289 = vector.broadcast %cst_86 : f32 to vector<4x64xf32>
    %290 = arith.subf %289, %282 : vector<4x64xf32>
    %291 = arith.mulf %290, %251 : vector<4x64xf32>
    %292 = arith.addf %288, %291 : vector<4x64xf32>
    %293 = vector.extract_strided_slice %280 {offsets = [0, 0], sizes = [4, 32], strides = [1, 1]} : vector<4x64xf32> to vector<4x32xf32>
    %294 = vector.extract_strided_slice %280 {offsets = [0, 32], sizes = [4, 32], strides = [1, 1]} : vector<4x64xf32> to vector<4x32xf32>
    %cst_87 = arith.constant dense<0.000000e+00> : vector<4x256xf32>
    %295 = tpu.matmul %287, %1, %cst_87 {dimension_numbers = #tpu.dot_dimension_numbers<[1], [0], [0], [1], [0, 0, 1, 1], [], []>} : vector<4x64xf32>, vector<64x256xf32>, vector<4x256xf32> -> vector<4x256xf32>
    %296 = arith.addf %37, %295 : vector<4x256xf32>
    %297 = vector.extract_strided_slice %296 {offsets = [0, 0], sizes = [4, 64], strides = [1, 1]} : vector<4x256xf32> to vector<4x64xf32>
    %298 = arith.negf %297 : vector<4x64xf32>
    %299 = math.exp %298 : vector<4x64xf32>
    %cst_88 = arith.constant 1.000000e+00 : f32
    %300 = vector.broadcast %cst_88 : f32 to vector<4x64xf32>
    %301 = arith.addf %300, %299 : vector<4x64xf32>
    %302 = arith.divf %300, %301 : vector<4x64xf32>
    %303 = vector.extract_strided_slice %296 {offsets = [0, 64], sizes = [4, 64], strides = [1, 1]} : vector<4x256xf32> to vector<4x64xf32>
    %304 = arith.negf %303 : vector<4x64xf32>
    %305 = math.exp %304 : vector<4x64xf32>
    %cst_89 = arith.constant 1.000000e+00 : f32
    %306 = vector.broadcast %cst_89 : f32 to vector<4x64xf32>
    %307 = arith.addf %306, %305 : vector<4x64xf32>
    %308 = arith.divf %306, %307 : vector<4x64xf32>
    %309 = vector.extract_strided_slice %296 {offsets = [0, 128], sizes = [4, 64], strides = [1, 1]} : vector<4x256xf32> to vector<4x64xf32>
    %310 = math.tanh %309 : vector<4x64xf32>
    %311 = vector.extract_strided_slice %296 {offsets = [0, 192], sizes = [4, 64], strides = [1, 1]} : vector<4x256xf32> to vector<4x64xf32>
    %312 = arith.negf %311 : vector<4x64xf32>
    %313 = math.exp %312 : vector<4x64xf32>
    %cst_90 = arith.constant 1.000000e+00 : f32
    %314 = vector.broadcast %cst_90 : f32 to vector<4x64xf32>
    %315 = arith.addf %314, %313 : vector<4x64xf32>
    %316 = arith.divf %314, %315 : vector<4x64xf32>
    %317 = arith.mulf %308, %292 : vector<4x64xf32>
    %318 = arith.mulf %302, %310 : vector<4x64xf32>
    %319 = arith.addf %317, %318 : vector<4x64xf32>
    %320 = math.tanh %319 : vector<4x64xf32>
    %321 = arith.mulf %316, %320 : vector<4x64xf32>
    %c6_91 = arith.constant 6 : index
    %c0_92 = arith.constant 0 : index
    %c0_93 = arith.constant 0 : index
    %322 = vector.load %arg1[%c6_91, %c0_92, %c0_93] : memref<8x4x64xf32, #tpu.memory_space<vmem>>, vector<1x4x64xf32>
    %323 = vector.shape_cast %322 : vector<1x4x64xf32> to vector<4x64xf32>
    %324 = arith.mulf %323, %321 : vector<4x64xf32>
    %cst_94 = arith.constant 1.000000e+00 : f32
    %325 = vector.broadcast %cst_94 : f32 to vector<4x64xf32>
    %326 = arith.subf %325, %323 : vector<4x64xf32>
    %327 = arith.mulf %326, %287 : vector<4x64xf32>
    %328 = arith.addf %324, %327 : vector<4x64xf32>
    %329 = arith.mulf %323, %319 : vector<4x64xf32>
    %cst_95 = arith.constant 1.000000e+00 : f32
    %330 = vector.broadcast %cst_95 : f32 to vector<4x64xf32>
    %331 = arith.subf %330, %323 : vector<4x64xf32>
    %332 = arith.mulf %331, %292 : vector<4x64xf32>
    %333 = arith.addf %329, %332 : vector<4x64xf32>
    %334 = vector.extract_strided_slice %321 {offsets = [0, 0], sizes = [4, 32], strides = [1, 1]} : vector<4x64xf32> to vector<4x32xf32>
    %335 = vector.extract_strided_slice %321 {offsets = [0, 32], sizes = [4, 32], strides = [1, 1]} : vector<4x64xf32> to vector<4x32xf32>
    %cst_96 = arith.constant dense<0.000000e+00> : vector<4x256xf32>
    %336 = tpu.matmul %328, %1, %cst_96 {dimension_numbers = #tpu.dot_dimension_numbers<[1], [0], [0], [1], [0, 0, 1, 1], [], []>} : vector<4x64xf32>, vector<64x256xf32>, vector<4x256xf32> -> vector<4x256xf32>
    %337 = arith.addf %42, %336 : vector<4x256xf32>
    %338 = vector.extract_strided_slice %337 {offsets = [0, 0], sizes = [4, 64], strides = [1, 1]} : vector<4x256xf32> to vector<4x64xf32>
    %339 = arith.negf %338 : vector<4x64xf32>
    %340 = math.exp %339 : vector<4x64xf32>
    %cst_97 = arith.constant 1.000000e+00 : f32
    %341 = vector.broadcast %cst_97 : f32 to vector<4x64xf32>
    %342 = arith.addf %341, %340 : vector<4x64xf32>
    %343 = arith.divf %341, %342 : vector<4x64xf32>
    %344 = vector.extract_strided_slice %337 {offsets = [0, 64], sizes = [4, 64], strides = [1, 1]} : vector<4x256xf32> to vector<4x64xf32>
    %345 = arith.negf %344 : vector<4x64xf32>
    %346 = math.exp %345 : vector<4x64xf32>
    %cst_98 = arith.constant 1.000000e+00 : f32
    %347 = vector.broadcast %cst_98 : f32 to vector<4x64xf32>
    %348 = arith.addf %347, %346 : vector<4x64xf32>
    %349 = arith.divf %347, %348 : vector<4x64xf32>
    %350 = vector.extract_strided_slice %337 {offsets = [0, 128], sizes = [4, 64], strides = [1, 1]} : vector<4x256xf32> to vector<4x64xf32>
    %351 = math.tanh %350 : vector<4x64xf32>
    %352 = vector.extract_strided_slice %337 {offsets = [0, 192], sizes = [4, 64], strides = [1, 1]} : vector<4x256xf32> to vector<4x64xf32>
    %353 = arith.negf %352 : vector<4x64xf32>
    %354 = math.exp %353 : vector<4x64xf32>
    %cst_99 = arith.constant 1.000000e+00 : f32
    %355 = vector.broadcast %cst_99 : f32 to vector<4x64xf32>
    %356 = arith.addf %355, %354 : vector<4x64xf32>
    %357 = arith.divf %355, %356 : vector<4x64xf32>
    %358 = arith.mulf %349, %333 : vector<4x64xf32>
    %359 = arith.mulf %343, %351 : vector<4x64xf32>
    %360 = arith.addf %358, %359 : vector<4x64xf32>
    %361 = math.tanh %360 : vector<4x64xf32>
    %362 = arith.mulf %357, %361 : vector<4x64xf32>
    %363 = vector.extract_strided_slice %362 {offsets = [0, 0], sizes = [4, 32], strides = [1, 1]} : vector<4x64xf32> to vector<4x32xf32>
    %364 = vector.extract_strided_slice %362 {offsets = [0, 32], sizes = [4, 32], strides = [1, 1]} : vector<4x64xf32> to vector<4x32xf32>
    %c0_100 = arith.constant 0 : index
    %c0_101 = arith.constant 0 : index
    %365 = vector.load %arg9[%c0_100, %c0_101] : memref<32x2xf32, #tpu.memory_space<vmem>>, vector<32x2xf32>
    %c0_102 = arith.constant 0 : index
    %c0_103 = arith.constant 0 : index
    %366 = vector.load %arg10[%c0_102, %c0_103] : memref<1x2xf32, #tpu.memory_space<vmem>>, vector<1x2xf32>
    %cst_104 = arith.constant 0.000000e+00 : f32
    %367 = vector.broadcast %cst_104 : f32 to vector<4x32xf32>
    %368 = arith.addf %88, %364 : vector<4x32xf32>
    %c0_105 = arith.constant 0 : index
    %c0_106 = arith.constant 0 : index
    %c0_107 = arith.constant 0 : index
    %369 = vector.load %arg2[%c0_105, %c0_106, %c0_107] : memref<8x4x1xf32, #tpu.memory_space<vmem>>, vector<1x4x1xf32>
    %370 = vector.shape_cast %369 : vector<1x4x1xf32> to vector<4x1xf32>
    %371 = vector.broadcast %370 : vector<4x1xf32> to vector<4x32xf32>
    %372 = arith.mulf %368, %371 : vector<4x32xf32>
    %cst_108 = arith.constant dense<0.000000e+00> : vector<4x2xf32>
    %373 = tpu.matmul %372, %365, %cst_108 {dimension_numbers = #tpu.dot_dimension_numbers<[1], [0], [0], [1], [0, 0, 1, 1], [], []>} : vector<4x32xf32>, vector<32x2xf32>, vector<4x2xf32> -> vector<4x2xf32>
    %374 = vector.broadcast %366 : vector<1x2xf32> to vector<4x2xf32>
    %375 = arith.addf %373, %374 : vector<4x2xf32>
    %c0_109 = arith.constant 0 : index
    %c0_110 = arith.constant 0 : index
    %c0_111 = arith.constant 0 : index
    %376 = vector.load %arg13[%c0_109, %c0_110, %c0_111] : memref<8x4x2xf32, #tpu.memory_space<vmem>>, vector<1x4x2xf32>
    %377 = vector.shape_cast %376 : vector<1x4x2xf32> to vector<4x2xf32>
    %378 = vector.shape_cast %375 : vector<4x2xf32> to vector<1x4x2xf32>
    tpu.vector_store %arg13[%c0_109, %c0_110, %c0_111], %378 {strides = array<i32>} : memref<8x4x2xf32, #tpu.memory_space<vmem>>, vector<1x4x2xf32>,
    %c0_112 = arith.constant 0 : index
    %c0_113 = arith.constant 0 : index
    %c0_114 = arith.constant 0 : index
    %379 = vector.load %arg3[%c0_112, %c0_113, %c0_114] : memref<8x4x1xf32, #tpu.memory_space<vmem>>, vector<1x4x1xf32>
    %380 = vector.shape_cast %379 : vector<1x4x1xf32> to vector<4x1xf32>
    %381 = vector.broadcast %380 : vector<4x1xf32> to vector<4x32xf32>
    %382 = arith.mulf %381, %372 : vector<4x32xf32>
    %383 = arith.addf %367, %382 : vector<4x32xf32>
    %384 = arith.addf %129, %335 : vector<4x32xf32>
    %c1_115 = arith.constant 1 : index
    %c0_116 = arith.constant 0 : index
    %c0_117 = arith.constant 0 : index
    %385 = vector.load %arg2[%c1_115, %c0_116, %c0_117] : memref<8x4x1xf32, #tpu.memory_space<vmem>>, vector<1x4x1xf32>
    %386 = vector.shape_cast %385 : vector<1x4x1xf32> to vector<4x1xf32>
    %387 = vector.broadcast %386 : vector<4x1xf32> to vector<4x32xf32>
    %388 = arith.mulf %384, %387 : vector<4x32xf32>
    %cst_118 = arith.constant dense<0.000000e+00> : vector<4x2xf32>
    %389 = tpu.matmul %388, %365, %cst_118 {dimension_numbers = #tpu.dot_dimension_numbers<[1], [0], [0], [1], [0, 0, 1, 1], [], []>} : vector<4x32xf32>, vector<32x2xf32>, vector<4x2xf32> -> vector<4x2xf32>
    %390 = vector.broadcast %366 : vector<1x2xf32> to vector<4x2xf32>
    %391 = arith.addf %389, %390 : vector<4x2xf32>
    %c1_119 = arith.constant 1 : index
    %c0_120 = arith.constant 0 : index
    %c0_121 = arith.constant 0 : index
    %392 = vector.load %arg13[%c1_119, %c0_120, %c0_121] : memref<8x4x2xf32, #tpu.memory_space<vmem>>, vector<1x4x2xf32>
    %393 = vector.shape_cast %392 : vector<1x4x2xf32> to vector<4x2xf32>
    %394 = vector.shape_cast %391 : vector<4x2xf32> to vector<1x4x2xf32>
    tpu.vector_store %arg13[%c1_119, %c0_120, %c0_121], %394 {strides = array<i32>} : memref<8x4x2xf32, #tpu.memory_space<vmem>>, vector<1x4x2xf32>,
    %c1_122 = arith.constant 1 : index
    %c0_123 = arith.constant 0 : index
    %c0_124 = arith.constant 0 : index
    %395 = vector.load %arg3[%c1_122, %c0_123, %c0_124] : memref<8x4x1xf32, #tpu.memory_space<vmem>>, vector<1x4x1xf32>
    %396 = vector.shape_cast %395 : vector<1x4x1xf32> to vector<4x1xf32>
    %397 = vector.broadcast %396 : vector<4x1xf32> to vector<4x32xf32>
    %398 = arith.mulf %397, %388 : vector<4x32xf32>
    %399 = arith.addf %383, %398 : vector<4x32xf32>
    %400 = arith.addf %170, %294 : vector<4x32xf32>
    %c2_125 = arith.constant 2 : index
    %c0_126 = arith.constant 0 : index
    %c0_127 = arith.constant 0 : index
    %401 = vector.load %arg2[%c2_125, %c0_126, %c0_127] : memref<8x4x1xf32, #tpu.memory_space<vmem>>, vector<1x4x1xf32>
    %402 = vector.shape_cast %401 : vector<1x4x1xf32> to vector<4x1xf32>
    %403 = vector.broadcast %402 : vector<4x1xf32> to vector<4x32xf32>
    %404 = arith.mulf %400, %403 : vector<4x32xf32>
    %cst_128 = arith.constant dense<0.000000e+00> : vector<4x2xf32>
    %405 = tpu.matmul %404, %365, %cst_128 {dimension_numbers = #tpu.dot_dimension_numbers<[1], [0], [0], [1], [0, 0, 1, 1], [], []>} : vector<4x32xf32>, vector<32x2xf32>, vector<4x2xf32> -> vector<4x2xf32>
    %406 = vector.broadcast %366 : vector<1x2xf32> to vector<4x2xf32>
    %407 = arith.addf %405, %406 : vector<4x2xf32>
    %c2_129 = arith.constant 2 : index
    %c0_130 = arith.constant 0 : index
    %c0_131 = arith.constant 0 : index
    %408 = vector.load %arg13[%c2_129, %c0_130, %c0_131] : memref<8x4x2xf32, #tpu.memory_space<vmem>>, vector<1x4x2xf32>
    %409 = vector.shape_cast %408 : vector<1x4x2xf32> to vector<4x2xf32>
    %410 = vector.shape_cast %407 : vector<4x2xf32> to vector<1x4x2xf32>
    tpu.vector_store %arg13[%c2_129, %c0_130, %c0_131], %410 {strides = array<i32>} : memref<8x4x2xf32, #tpu.memory_space<vmem>>, vector<1x4x2xf32>,
    %c2_132 = arith.constant 2 : index
    %c0_133 = arith.constant 0 : index
    %c0_134 = arith.constant 0 : index
    %411 = vector.load %arg3[%c2_132, %c0_133, %c0_134] : memref<8x4x1xf32, #tpu.memory_space<vmem>>, vector<1x4x1xf32>
    %412 = vector.shape_cast %411 : vector<1x4x1xf32> to vector<4x1xf32>
    %413 = vector.broadcast %412 : vector<4x1xf32> to vector<4x32xf32>
    %414 = arith.mulf %413, %404 : vector<4x32xf32>
    %415 = arith.addf %399, %414 : vector<4x32xf32>
    %416 = arith.addf %211, %253 : vector<4x32xf32>
    %c3_135 = arith.constant 3 : index
    %c0_136 = arith.constant 0 : index
    %c0_137 = arith.constant 0 : index
    %417 = vector.load %arg2[%c3_135, %c0_136, %c0_137] : memref<8x4x1xf32, #tpu.memory_space<vmem>>, vector<1x4x1xf32>
    %418 = vector.shape_cast %417 : vector<1x4x1xf32> to vector<4x1xf32>
    %419 = vector.broadcast %418 : vector<4x1xf32> to vector<4x32xf32>
    %420 = arith.mulf %416, %419 : vector<4x32xf32>
    %cst_138 = arith.constant dense<0.000000e+00> : vector<4x2xf32>
    %421 = tpu.matmul %420, %365, %cst_138 {dimension_numbers = #tpu.dot_dimension_numbers<[1], [0], [0], [1], [0, 0, 1, 1], [], []>} : vector<4x32xf32>, vector<32x2xf32>, vector<4x2xf32> -> vector<4x2xf32>
    %422 = vector.broadcast %366 : vector<1x2xf32> to vector<4x2xf32>
    %423 = arith.addf %421, %422 : vector<4x2xf32>
    %c3_139 = arith.constant 3 : index
    %c0_140 = arith.constant 0 : index
    %c0_141 = arith.constant 0 : index
    %424 = vector.load %arg13[%c3_139, %c0_140, %c0_141] : memref<8x4x2xf32, #tpu.memory_space<vmem>>, vector<1x4x2xf32>
    %425 = vector.shape_cast %424 : vector<1x4x2xf32> to vector<4x2xf32>
    %426 = vector.shape_cast %423 : vector<4x2xf32> to vector<1x4x2xf32>
    tpu.vector_store %arg13[%c3_139, %c0_140, %c0_141], %426 {strides = array<i32>} : memref<8x4x2xf32, #tpu.memory_space<vmem>>, vector<1x4x2xf32>,
    %c3_142 = arith.constant 3 : index
    %c0_143 = arith.constant 0 : index
    %c0_144 = arith.constant 0 : index
    %427 = vector.load %arg3[%c3_142, %c0_143, %c0_144] : memref<8x4x1xf32, #tpu.memory_space<vmem>>, vector<1x4x1xf32>
    %428 = vector.shape_cast %427 : vector<1x4x1xf32> to vector<4x1xf32>
    %429 = vector.broadcast %428 : vector<4x1xf32> to vector<4x32xf32>
    %430 = arith.mulf %429, %420 : vector<4x32xf32>
    %431 = arith.addf %415, %430 : vector<4x32xf32>
    %432 = arith.addf %252, %212 : vector<4x32xf32>
    %c4_145 = arith.constant 4 : index
    %c0_146 = arith.constant 0 : index
    %c0_147 = arith.constant 0 : index
    %433 = vector.load %arg2[%c4_145, %c0_146, %c0_147] : memref<8x4x1xf32, #tpu.memory_space<vmem>>, vector<1x4x1xf32>
    %434 = vector.shape_cast %433 : vector<1x4x1xf32> to vector<4x1xf32>
    %435 = vector.broadcast %434 : vector<4x1xf32> to vector<4x32xf32>
    %436 = arith.mulf %432, %435 : vector<4x32xf32>
    %cst_148 = arith.constant dense<0.000000e+00> : vector<4x2xf32>
    %437 = tpu.matmul %436, %365, %cst_148 {dimension_numbers = #tpu.dot_dimension_numbers<[1], [0], [0], [1], [0, 0, 1, 1], [], []>} : vector<4x32xf32>, vector<32x2xf32>, vector<4x2xf32> -> vector<4x2xf32>
    %438 = vector.broadcast %366 : vector<1x2xf32> to vector<4x2xf32>
    %439 = arith.addf %437, %438 : vector<4x2xf32>
    %c4_149 = arith.constant 4 : index
    %c0_150 = arith.constant 0 : index
    %c0_151 = arith.constant 0 : index
    %440 = vector.load %arg13[%c4_149, %c0_150, %c0_151] : memref<8x4x2xf32, #tpu.memory_space<vmem>>, vector<1x4x2xf32>
    %441 = vector.shape_cast %440 : vector<1x4x2xf32> to vector<4x2xf32>
    %442 = vector.shape_cast %439 : vector<4x2xf32> to vector<1x4x2xf32>
    tpu.vector_store %arg13[%c4_149, %c0_150, %c0_151], %442 {strides = array<i32>} : memref<8x4x2xf32, #tpu.memory_space<vmem>>, vector<1x4x2xf32>,
    %c4_152 = arith.constant 4 : index
    %c0_153 = arith.constant 0 : index
    %c0_154 = arith.constant 0 : index
    %443 = vector.load %arg3[%c4_152, %c0_153, %c0_154] : memref<8x4x1xf32, #tpu.memory_space<vmem>>, vector<1x4x1xf32>
    %444 = vector.shape_cast %443 : vector<1x4x1xf32> to vector<4x1xf32>
    %445 = vector.broadcast %444 : vector<4x1xf32> to vector<4x32xf32>
    %446 = arith.mulf %445, %436 : vector<4x32xf32>
    %447 = arith.addf %431, %446 : vector<4x32xf32>
    %448 = arith.addf %293, %171 : vector<4x32xf32>
    %c5_155 = arith.constant 5 : index
    %c0_156 = arith.constant 0 : index
    %c0_157 = arith.constant 0 : index
    %449 = vector.load %arg2[%c5_155, %c0_156, %c0_157] : memref<8x4x1xf32, #tpu.memory_space<vmem>>, vector<1x4x1xf32>
    %450 = vector.shape_cast %449 : vector<1x4x1xf32> to vector<4x1xf32>
    %451 = vector.broadcast %450 : vector<4x1xf32> to vector<4x32xf32>
    %452 = arith.mulf %448, %451 : vector<4x32xf32>
    %cst_158 = arith.constant dense<0.000000e+00> : vector<4x2xf32>
    %453 = tpu.matmul %452, %365, %cst_158 {dimension_numbers = #tpu.dot_dimension_numbers<[1], [0], [0], [1], [0, 0, 1, 1], [], []>} : vector<4x32xf32>, vector<32x2xf32>, vector<4x2xf32> -> vector<4x2xf32>
    %454 = vector.broadcast %366 : vector<1x2xf32> to vector<4x2xf32>
    %455 = arith.addf %453, %454 : vector<4x2xf32>
    %c5_159 = arith.constant 5 : index
    %c0_160 = arith.constant 0 : index
    %c0_161 = arith.constant 0 : index
    %456 = vector.load %arg13[%c5_159, %c0_160, %c0_161] : memref<8x4x2xf32, #tpu.memory_space<vmem>>, vector<1x4x2xf32>
    %457 = vector.shape_cast %456 : vector<1x4x2xf32> to vector<4x2xf32>
    %458 = vector.shape_cast %455 : vector<4x2xf32> to vector<1x4x2xf32>
    tpu.vector_store %arg13[%c5_159, %c0_160, %c0_161], %458 {strides = array<i32>} : memref<8x4x2xf32, #tpu.memory_space<vmem>>, vector<1x4x2xf32>,
    %c5_162 = arith.constant 5 : index
    %c0_163 = arith.constant 0 : index
    %c0_164 = arith.constant 0 : index
    %459 = vector.load %arg3[%c5_162, %c0_163, %c0_164] : memref<8x4x1xf32, #tpu.memory_space<vmem>>, vector<1x4x1xf32>
    %460 = vector.shape_cast %459 : vector<1x4x1xf32> to vector<4x1xf32>
    %461 = vector.broadcast %460 : vector<4x1xf32> to vector<4x32xf32>
    %462 = arith.mulf %461, %452 : vector<4x32xf32>
    %463 = arith.addf %447, %462 : vector<4x32xf32>
    %464 = arith.addf %334, %130 : vector<4x32xf32>
    %c6_165 = arith.constant 6 : index
    %c0_166 = arith.constant 0 : index
    %c0_167 = arith.constant 0 : index
    %465 = vector.load %arg2[%c6_165, %c0_166, %c0_167] : memref<8x4x1xf32, #tpu.memory_space<vmem>>, vector<1x4x1xf32>
    %466 = vector.shape_cast %465 : vector<1x4x1xf32> to vector<4x1xf32>
    %467 = vector.broadcast %466 : vector<4x1xf32> to vector<4x32xf32>
    %468 = arith.mulf %464, %467 : vector<4x32xf32>
    %cst_168 = arith.constant dense<0.000000e+00> : vector<4x2xf32>
    %469 = tpu.matmul %468, %365, %cst_168 {dimension_numbers = #tpu.dot_dimension_numbers<[1], [0], [0], [1], [0, 0, 1, 1], [], []>} : vector<4x32xf32>, vector<32x2xf32>, vector<4x2xf32> -> vector<4x2xf32>
    %470 = vector.broadcast %366 : vector<1x2xf32> to vector<4x2xf32>
    %471 = arith.addf %469, %470 : vector<4x2xf32>
    %c6_169 = arith.constant 6 : index
    %c0_170 = arith.constant 0 : index
    %c0_171 = arith.constant 0 : index
    %472 = vector.load %arg13[%c6_169, %c0_170, %c0_171] : memref<8x4x2xf32, #tpu.memory_space<vmem>>, vector<1x4x2xf32>
    %473 = vector.shape_cast %472 : vector<1x4x2xf32> to vector<4x2xf32>
    %474 = vector.shape_cast %471 : vector<4x2xf32> to vector<1x4x2xf32>
    tpu.vector_store %arg13[%c6_169, %c0_170, %c0_171], %474 {strides = array<i32>} : memref<8x4x2xf32, #tpu.memory_space<vmem>>, vector<1x4x2xf32>,
    %c6_172 = arith.constant 6 : index
    %c0_173 = arith.constant 0 : index
    %c0_174 = arith.constant 0 : index
    %475 = vector.load %arg3[%c6_172, %c0_173, %c0_174] : memref<8x4x1xf32, #tpu.memory_space<vmem>>, vector<1x4x1xf32>
    %476 = vector.shape_cast %475 : vector<1x4x1xf32> to vector<4x1xf32>
    %477 = vector.broadcast %476 : vector<4x1xf32> to vector<4x32xf32>
    %478 = arith.mulf %477, %468 : vector<4x32xf32>
    %479 = arith.addf %463, %478 : vector<4x32xf32>
    %480 = arith.addf %363, %89 : vector<4x32xf32>
    %c7_175 = arith.constant 7 : index
    %c0_176 = arith.constant 0 : index
    %c0_177 = arith.constant 0 : index
    %481 = vector.load %arg2[%c7_175, %c0_176, %c0_177] : memref<8x4x1xf32, #tpu.memory_space<vmem>>, vector<1x4x1xf32>
    %482 = vector.shape_cast %481 : vector<1x4x1xf32> to vector<4x1xf32>
    %483 = vector.broadcast %482 : vector<4x1xf32> to vector<4x32xf32>
    %484 = arith.mulf %480, %483 : vector<4x32xf32>
    %cst_178 = arith.constant dense<0.000000e+00> : vector<4x2xf32>
    %485 = tpu.matmul %484, %365, %cst_178 {dimension_numbers = #tpu.dot_dimension_numbers<[1], [0], [0], [1], [0, 0, 1, 1], [], []>} : vector<4x32xf32>, vector<32x2xf32>, vector<4x2xf32> -> vector<4x2xf32>
    %486 = vector.broadcast %366 : vector<1x2xf32> to vector<4x2xf32>
    %487 = arith.addf %485, %486 : vector<4x2xf32>
    %c7_179 = arith.constant 7 : index
    %c0_180 = arith.constant 0 : index
    %c0_181 = arith.constant 0 : index
    %488 = vector.load %arg13[%c7_179, %c0_180, %c0_181] : memref<8x4x2xf32, #tpu.memory_space<vmem>>, vector<1x4x2xf32>
    %489 = vector.shape_cast %488 : vector<1x4x2xf32> to vector<4x2xf32>
    %490 = vector.shape_cast %487 : vector<4x2xf32> to vector<1x4x2xf32>
    tpu.vector_store %arg13[%c7_179, %c0_180, %c0_181], %490 {strides = array<i32>} : memref<8x4x2xf32, #tpu.memory_space<vmem>>, vector<1x4x2xf32>,
    %c7_182 = arith.constant 7 : index
    %c0_183 = arith.constant 0 : index
    %c0_184 = arith.constant 0 : index
    %491 = vector.load %arg3[%c7_182, %c0_183, %c0_184] : memref<8x4x1xf32, #tpu.memory_space<vmem>>, vector<1x4x1xf32>
    %492 = vector.shape_cast %491 : vector<1x4x1xf32> to vector<4x1xf32>
    %493 = vector.broadcast %492 : vector<4x1xf32> to vector<4x32xf32>
    %494 = arith.mulf %493, %484 : vector<4x32xf32>
    %495 = arith.addf %479, %494 : vector<4x32xf32>
    %c0_185 = arith.constant 0 : index
    %c0_186 = arith.constant 0 : index
    %496 = vector.load %arg11[%c0_185, %c0_186] : memref<32x2xf32, #tpu.memory_space<vmem>>, vector<32x2xf32>
    %cst_187 = arith.constant dense<0.000000e+00> : vector<4x2xf32>
    %497 = tpu.matmul %495, %496, %cst_187 {dimension_numbers = #tpu.dot_dimension_numbers<[1], [0], [0], [1], [0, 0, 1, 1], [], []>} : vector<4x32xf32>, vector<32x2xf32>, vector<4x2xf32> -> vector<4x2xf32>
    %c0_188 = arith.constant 0 : index
    %c0_189 = arith.constant 0 : index
    %498 = vector.load %arg12[%c0_188, %c0_189] : memref<1x2xf32, #tpu.memory_space<vmem>>, vector<1x2xf32>
    %499 = vector.broadcast %498 : vector<1x2xf32> to vector<4x2xf32>
    %500 = arith.addf %497, %499 : vector<4x2xf32>
    %c0_190 = arith.constant 0 : index
    %c0_191 = arith.constant 0 : index
    %501 = vector.load %arg14[%c0_190, %c0_191] : memref<4x2xf32, #tpu.memory_space<vmem>>, vector<4x2xf32>
    tpu.vector_store %arg14[%c0_190, %c0_191], %500 {strides = array<i32>} : memref<4x2xf32, #tpu.memory_space<vmem>>, vector<4x2xf32>,
    return
  }
}

</mosaic_0001>

<bundles_post_ra>
// kernel: neg.1
= control target key start
LH: loop header
LB: loop body
LE: loop exit
PB: predicated region body
PF: predicated region fallthrough
CT: control target
= control target key end

     0   :  { %s24_s0 = inlined_call_operand.vmem [shape: s32[4], index: 0, kind: input, shape index: {}]   ;;  %s25_s1 = inlined_call_operand.vmem [shape: s32[4], index: 1, kind: output, shape index: {}]  }
   0x1   :  { %v2_v0 = vld [vmem:[%s24_s0] sm:$0x1] }
   0x2   :  { %v5_v1 = vsub.s32 0, %v2_v0 }
   0x4   :  { %7 = vst [vmem:[%s25_s1] sm:$0x1] %v5_v1 }

// kernel: rnn_forward.1
= control target key start
LH: loop header
LB: loop body
LE: loop exit
PB: predicated region body
PF: predicated region fallthrough
CT: control target
= control target key end

     0   :  { %v2852_v3 = vmov 0.0   ;;  %vm83_vm0 = vcmask 261120   ;;  %s2853_s16 = smov 64   ;;  %vm704_vm1 = vcmask 523264   ;;  %v73_v34 = vlaneseq  ;;  %s3711_s4 = inlined_call_operand.vmem [shape: f32[32,256], index: 4, kind: input, shape index: {}]   ;;  %s3712_s0 = inlined_call_operand.vmem [shape: f32[8,4,32], index: 0, kind: input, shape index: {}]   ;;  %s3713_s8 = inlined_call_operand.vmem [shape: f32[1,64], index: 8, kind: input, shape index: {}]   ;;  %s3714_s5 = inlined_call_operand.vmem [shape: f32[64,256], index: 5, kind: input, shape index: {}]   ;;  %s3715_s7 = inlined_call_operand.vmem [shape: f32[1,64], index: 7, kind: input, shape index: {}]   ;;  %s3716_s6 = inlined_call_operand.vmem [shape: f32[1,256], index: 6, kind: input, shape index: {}]   ;;  %s3717_s1 = inlined_call_operand.vmem [shape: f32[8,4,64], index: 1, kind: input, shape index: {}]   ;;  %s3718_s2 = inlined_call_operand.vmem [shape: f32[8,4,1], index: 2, kind: input, shape index: {}]   ;;  %s3719_s3 = inlined_call_operand.vmem [shape: f32[8,4,1], index: 3, kind: input, shape index: {}]   ;;  %s3720_s9 = inlined_call_operand.vmem [shape: f32[32,2], index: 9, kind: input, shape index: {}]   ;;  %s3721_s11 = inlined_call_operand.vmem [shape: f32[32,2], index: 11, kind: input, shape index: {}]   ;;  %s3722_s10 = inlined_call_operand.vmem [shape: f32[1,2], index: 10, kind: input, shape index: {}]   ;;  %s3723_s13 = inlined_call_operand.vmem [shape: f32[8,4,2], index: 13, kind: output, shape index: {0}]   ;;  %s3724_s12 = inlined_call_operand.vmem [shape: f32[1,2], index: 12, kind: input, shape index: {}]   ;;  %s3725_s14 = inlined_call_operand.vmem [shape: f32[4,2], index: 14, kind: output, shape index: {1}]  }
   0x1   :  { %v2935_v0 = vld [vmem:[%s3711_s4 + $0x38] sm:$0xff]  ;;  %v2940_v1 = vld [vmem:[%s3711_s4 + $0x30] sm:$0xff]  ;;  %v2945_v2 = vld [vmem:[%s3711_s4 + $0x28] sm:$0xff]  ;;  %151 = vmatprep.mubr.f32.mxu0 %v2852_v3  ;;  %227 = vmatprep.mubr.f32.mxu1 %v2852_v3  ;;  %vm2856_vm2 = vmmov 0   ;;  %vm1735_vm3 = vcmask 11264  }
   0x2   :  { %111 = vmatprep.subr.mxu0 %v2935_v0  ;;  %v2953_v4 = vld [vmem:[%s3711_s4 + $0x20] sm:$0xff]  ;;  %187 = vmatprep.subr.mxu1 %v2935_v0  ;;  %v2960_v5 = vld [vmem:[%s3711_s4 + $0x18] sm:$0xff]  ;;  %v2967_v6 = vld [vmem:[%s3711_s4 + $0x10] sm:$0xff]  ;;  %v74_v36 = vshrl.u32 %v73_v34, 7 }
   0x3   :  { %112 = vmatpush1.msra.mxu0 %v2940_v1  ;;  %188 = vmatpush1.msra.mxu1 %v2940_v1  ;;  %v2974_v7 = vld [vmem:[%s3711_s4 + $0x8] sm:$0xff]  ;;  %v2981_v8 = vld [vmem:[%s3711_s4] sm:$0xff]  ;;  %v2533_v12 = vld [vmem:[%s3712_s0 + $0x10] sm:$0xf] }
   0x4   :  { %113 = vmatprep.subr.mxu0 %v2945_v2  ;;  %189 = vmatprep.subr.mxu1 %v2945_v2  ;;  %v71_v9 = vld [vmem:[%s3712_s0] sm:$0xf]  ;;  %v2529_v11 = vld [vmem:[%s3712_s0 + $0x8] sm:$0xf]  ;;  %v2537_v13 = vld [vmem:[%s3712_s0 + $0x18] sm:$0xf] }
   0x5   :  { %114 = vmatpush1.msra.mxu0 %v2953_v4  ;;  %190 = vmatpush1.msra.mxu1 %v2953_v4  ;;  %v2998_v10 = vld [vmem:[%s3713_s8] ss:$0 sm:$0xff]  ;;  %v3041_v14 = vld [vmem:[%s3714_s5 + $0x78] sm:$0xff]  ;;  %v3047_v15 = vld [vmem:[%s3714_s5 + $0x70] sm:$0xff]  ;;  %v75_v38 = vsub.s32 0, %v74_v36  ;;  %v79_v48 = vsub.s32 1, %v74_v36 }
   0x6   :  { %115 = vmatprep.subr.mxu0 %v2960_v5  ;;  %191 = vmatprep.subr.mxu1 %v2960_v5  ;;  %v3053_v16 = vld [vmem:[%s3714_s5 + $0x68] sm:$0xff]  ;;  %v3060_v17 = vld [vmem:[%s3714_s5 + $0x60] sm:$0xff]  ;;  %v3066_v18 = vld [vmem:[%s3714_s5 + $0x58] sm:$0xff] }
   0x7   :  { %116 = vmatpush1.msra.mxu0 %v2967_v6  ;;  %192 = vmatpush1.msra.mxu1 %v2967_v6  ;;  %v3073_v19 = vld [vmem:[%s3714_s5 + $0x50] sm:$0xff]  ;;  %v3079_v20 = vld [vmem:[%s3714_s5 + $0x48] sm:$0xff]  ;;  %v3085_v21 = vld [vmem:[%s3714_s5 + $0x40] sm:$0xff] }
   0x8   :  { %117 = vmatprep.subr.mxu0 %v2974_v7  ;;  %193 = vmatprep.subr.mxu1 %v2974_v7  ;;  %v3091_v22 = vld [vmem:[%s3714_s5 + $0x38] sm:$0xff]  ;;  %v3097_v23 = vld [vmem:[%s3714_s5 + $0x30] sm:$0xff]  ;;  %v3103_v24 = vld [vmem:[%s3714_s5 + $0x28] sm:$0xff] }
   0x9   :  { %118 = vmatpush1.msra.mxu0 %v2981_v8  ;;  %194 = vmatpush1.msra.mxu1 %v2981_v8  ;;  %v3109_v25 = vld [vmem:[%s3714_s5 + $0x20] sm:$0xff]  ;;  %v3115_v26 = vld [vmem:[%s3714_s5 + $0x18] sm:$0xff]  ;;  %v3121_v27 = vld [vmem:[%s3714_s5 + $0x10] sm:$0xff] }
   0xa   :  { %2526 = vmatmul.mubr.msk.f32.vlgmr.msra.gmra.mxu0 %vm83_vm0, %v71_v9  ;;  %263 = vmatprep.subr.mxu0 %v2935_v0  ;;  %v3127_v28 = vld [vmem:[%s3714_s5 + $0x8] sm:$0xff]  ;;  %v3133_v29 = vld [vmem:[%s3714_s5] sm:$0xff]  ;;  %v2535_v60 = vld [vmem:[%s3712_s0 + $0x14] sm:$0xf] }
   0xb   :  { %264 = vmatpush1.msra.mxu0 %v2940_v1  ;;  %303 = vmatprep.mubr.f32.mxu0 %v2852_v3  ;;  %v3139_v30 = vld [vmem:[%s3715_s7] ss:$0 sm:$0xff]  ;;  %v2527_v58 = vld [vmem:[%s3712_s0 + $0x4] sm:$0xf]  ;;  %v2531_v59 = vld [vmem:[%s3712_s0 + $0xc] sm:$0xf] }
   0xc   :  { %265 = vmatprep.subr.mxu0 %v2945_v2  ;;  %793 = vrot.lane.b32.xlu0 %v2998_v10, %s2853_s16  ;;  %v70_v39 = vld [vmem:[%s3716_s6] sm:$0x3]  ;;  %v2539_v61 = vld [vmem:[%s3712_s0 + $0x1c] sm:$0xf] }
   0xd   :  { %266 = vmatpush1.msra.mxu0 %v2953_v4  ;;  %339 = vmatprep.subr.mxu1 %v2935_v0  ;;  %v3176_v42 = vrot.slane %v70_v39, %v75_v38  ;;  %v3181_v49 = vrot.slane %v70_v39, %v79_v48  ;;  %v805_v9 = vld [vmem:[%s3717_s1] sm:$0xf] }
   0xe   :  { %267 = vmatprep.subr.mxu0 %v2960_v5  ;;  %2528 = vmatmul.mubr.msk.f32.vlgmr.msra.gmra.mxu1 %vm83_vm0, %v2527_v58 }
   0xf   :  { %268 = vmatpush1.msra.mxu0 %v2967_v6  ;;  %340 = vmatpush1.msra.mxu1 %v2940_v1 }
  0x10   :  { %269 = vmatprep.subr.mxu0 %v2974_v7  ;;  %379 = vmatprep.mubr.f32.mxu1 %v2852_v3 }
  0x11   :  { %270 = vmatpush1.msra.mxu0 %v2981_v8  ;;  %341 = vmatprep.subr.mxu1 %v2945_v2 }
  0x12   :  { %2530 = vmatmul.mubr.msk.f32.vlgmr.msra.gmra.mxu0 %vm83_vm0, %v2529_v11  ;;  %415 = vmatprep.subr.mxu0 %v2935_v0  ;;  %v811_v11 = vsub.f32 1.0, %v805_v9 }
  0x13   :  { %416 = vmatpush1.msra.mxu0 %v2940_v1  ;;  %455 = vmatprep.mubr.f32.mxu0 %v2852_v3 }
  0x14   :  { %417 = vmatprep.subr.mxu0 %v2945_v2  ;;  %342 = vmatpush1.msra.mxu1 %v2953_v4 }
  0x15   :  { %418 = vmatpush1.msra.mxu0 %v2953_v4  ;;  %343 = vmatprep.subr.mxu1 %v2960_v5 }
  0x16   :  { %419 = vmatprep.subr.mxu0 %v2960_v5  ;;  %344 = vmatpush1.msra.mxu1 %v2967_v6 }
  0x17   :  { %420 = vmatpush1.msra.mxu0 %v2967_v6  ;;  %345 = vmatprep.subr.mxu1 %v2974_v7 }
  0x18   :  { %421 = vmatprep.subr.mxu0 %v2974_v7  ;;  %346 = vmatpush1.msra.mxu1 %v2981_v8 }
  0x19   :  { %422 = vmatpush1.msra.mxu0 %v2981_v8  ;;  %2532 = vmatmul.mubr.msk.f32.vlgmr.msra.gmra.mxu1 %vm83_vm0, %v2531_v59 }
  0x1a   :  { %2534 = vmatmul.mubr.msk.f32.vlgmr.msra.gmra.mxu0 %vm83_vm0, %v2533_v12  ;;  %567 = vmatprep.subr.mxu0 %v2935_v0  ;;  %v812_v12 = vmul.f32 %v3139_v30, %v811_v11 }
  0x1b   :  { %568 = vmatpush1.msra.mxu0 %v2940_v1  ;;  %607 = vmatprep.mubr.f32.mxu0 %v2852_v3 }
  0x1c   :  { %569 = vmatprep.subr.mxu0 %v2945_v2  ;;  %491 = vmatprep.subr.mxu1 %v2935_v0 }
  0x1d   :  { %570 = vmatpush1.msra.mxu0 %v2953_v4  ;;  %492 = vmatpush1.msra.mxu1 %v2940_v1 }
  0x1e   :  { %571 = vmatprep.subr.mxu0 %v2960_v5  ;;  %531 = vmatprep.mubr.f32.mxu1 %v2852_v3 }
  0x1f   :  { %572 = vmatpush1.msra.mxu0 %v2967_v6  ;;  %493 = vmatprep.subr.mxu1 %v2945_v2 }
  0x20   :  { %573 = vmatprep.subr.mxu0 %v2974_v7  ;;  %494 = vmatpush1.msra.mxu1 %v2953_v4 }
  0x21   :  { %574 = vmatpush1.msra.mxu0 %v2981_v8  ;;  %495 = vmatprep.subr.mxu1 %v2960_v5 }
  0x22   :  { %2538 = vmatmul.mubr.msk.f32.vlgmr.msra.gmra.mxu0 %vm83_vm0, %v2537_v13  ;;  %723 = vmatprep.subr.mxu0 %v3041_v14 }
  0x23   :  { %724 = vmatpush1.msra.mxu0 %v3047_v15  ;;  %771 = vmatprep.mubr.f32.mxu0 %v2852_v3 }
  0x24   :  { %725 = vmatprep.subr.mxu0 %v3053_v16  ;;  %496 = vmatpush1.msra.mxu1 %v2967_v6 }
  0x25   :  { %726 = vmatpush1.msra.mxu0 %v3060_v17  ;;  %497 = vmatprep.subr.mxu1 %v2974_v7 }
  0x26   :  { %727 = vmatprep.subr.mxu0 %v3066_v18  ;;  %498 = vmatpush1.msra.mxu1 %v2981_v8 }
  0x27   :  { %728 = vmatpush1.msra.mxu0 %v3073_v19  ;;  %2536 = vmatmul.mubr.msk.f32.vlgmr.msra.gmra.mxu1 %vm83_vm0, %v2535_v60 }
  0x28   :  { %729 = vmatprep.subr.mxu0 %v3079_v20  ;;  %643 = vmatprep.subr.mxu1 %v2935_v0 }
  0x29   :  { %730 = vmatpush1.msra.mxu0 %v3085_v21  ;;  %644 = vmatpush1.msra.mxu1 %v2940_v1 }
  0x2a   :  { %731 = vmatprep.subr.mxu0 %v3091_v22  ;;  %683 = vmatprep.mubr.f32.mxu1 %v2852_v3 }
  0x2b   :  { %732 = vmatpush1.msra.mxu0 %v3097_v23  ;;  %645 = vmatprep.subr.mxu1 %v2945_v2 }
  0x2c   :  { %733 = vmatprep.subr.mxu0 %v3103_v24  ;;  %646 = vmatpush1.msra.mxu1 %v2953_v4 }
  0x2d   :  { %734 = vmatpush1.msra.mxu0 %v3109_v25  ;;  %647 = vmatprep.subr.mxu1 %v2960_v5 }
  0x2e   :  { %735 = vmatprep.subr.mxu0 %v3115_v26  ;;  %648 = vmatpush1.msra.mxu1 %v2967_v6 }
  0x2f   :  { %736 = vmatpush1.msra.mxu0 %v3121_v27  ;;  %649 = vmatprep.subr.mxu1 %v2974_v7 }
  0x30   :  { %737 = vmatprep.subr.mxu0 %v3127_v28  ;;  %650 = vmatpush1.msra.mxu1 %v2981_v8 }
  0x31   :  { %738 = vmatpush1.msra.mxu0 %v3133_v29  ;;  %2540 = vmatmul.mubr.msk.f32.vlgmr.msra.gmra.mxu1 %vm83_vm0, %v2539_v61 }
  0x32   :  { %2543 = vmatmul.mubr.msk.f32.vlgmr.msra.gmra.mxu0 %vm704_vm1, %v3139_v30  ;;  %959 = vmatprep.subr.mxu0 %v3041_v14 }
  0x33   :  { %960 = vmatpush1.msra.mxu0 %v3047_v15  ;;  %1007 = vmatprep.mubr.f32.mxu0 %v2852_v3 }
  0x34   :  { %961 = vmatprep.subr.mxu0 %v3053_v16  ;;  %840 = vmatprep.subr.mxu1 %v3041_v14 }
  0x35   :  { %962 = vmatpush1.msra.mxu0 %v3060_v17  ;;  %841 = vmatpush1.msra.mxu1 %v3047_v15 }
  0x36   :  { %963 = vmatprep.subr.mxu0 %v3066_v18  ;;  %888 = vmatprep.mubr.f32.mxu1 %v2852_v3 }
  0x37   :  { %964 = vmatpush1.msra.mxu0 %v3073_v19  ;;  %842 = vmatprep.subr.mxu1 %v3053_v16 }
  0x38   :  { %965 = vmatprep.subr.mxu0 %v3079_v20  ;;  %843 = vmatpush1.msra.mxu1 %v3060_v17 }
  0x39   :  { %966 = vmatpush1.msra.mxu0 %v3085_v21  ;;  %844 = vmatprep.subr.mxu1 %v3066_v18 }
  0x3a   :  { %967 = vmatprep.subr.mxu0 %v3091_v22  ;;  %845 = vmatpush1.msra.mxu1 %v3073_v19 }
  0x3b   :  { %968 = vmatpush1.msra.mxu0 %v3097_v23  ;;  %846 = vmatprep.subr.mxu1 %v3079_v20 }
  0x3c   :  { %969 = vmatprep.subr.mxu0 %v3103_v24  ;;  %847 = vmatpush1.msra.mxu1 %v3085_v21 }
  0x3d   :  { %970 = vmatpush1.msra.mxu0 %v3109_v25  ;;  %848 = vmatprep.subr.mxu1 %v3091_v22 }
  0x3e   :  { %971 = vmatprep.subr.mxu0 %v3115_v26  ;;  %849 = vmatpush1.msra.mxu1 %v3097_v23 }
  0x3f   :  { %972 = vmatpush1.msra.mxu0 %v3121_v27  ;;  %850 = vmatprep.subr.mxu1 %v3103_v24 }
  0x40   :  { %973 = vmatprep.subr.mxu0 %v3127_v28  ;;  %851 = vmatpush1.msra.mxu1 %v3109_v25 }
  0x41   :  { %974 = vmatpush1.msra.mxu0 %v3133_v29  ;;  %852 = vmatprep.subr.mxu1 %v3115_v26 }
  0x42   :  { %1197 = vmatprep.subr.mxu0 %v3041_v14  ;;  %853 = vmatpush1.msra.mxu1 %v3121_v27 }
  0x43   :  { %854 = vmatprep.subr.mxu1 %v3127_v28 }
  0x44   :  { %855 = vmatpush1.msra.mxu1 %v3133_v29 }
  0x45   :  { %1078 = vmatprep.subr.mxu1 %v3041_v14 }
  0x7e   :  { %v794_v0 = vpop.permute.xlu0 %793 }
  0xca   :  { %v153_v31 = vpop.f32.mrf.mxu0 }
  0xcb   :  { %v154_v44 = vadd.f32 %v153_v31, %v3176_v42 }
  0xcc   :  { %v155_v32 = vpop.f32.mrf.mxu0 }
  0xcd   :  { %v156_v51 = vadd.f32 %v155_v32, %v3181_v49  ;;  %v819_v32 = vmul.f32 %v2998_v10, %v811_v11 }
  0xce   :  { %v229_v10 = vpop.f32.mrf.mxu1 }
  0xd0   :  { %v231_v30 = vpop.f32.mrf.mxu1 }
  0xd2   :  { %v3163_v33 = vpop.f32.mrf.mxu0 }
  0xd4   :  { %v3165_v35 = vpop.f32.mrf.mxu0 }
  0xda   :  { %v3167_v37 = vpop.f32.mrf.mxu0 }
  0xdc   :  { %v3172_v40 = vpop.f32.mrf.mxu0 }
  0xe2   :  { %v3174_v41 = vpop.f32.mrf.mxu0 }
  0xe4   :  { %v3178_v43 = vpop.f32.mrf.mxu0 }
  0xf2   :  { %v773_v45 = vpop.f32.mrf.mxu0 }
  0xf3   :  { %v778_v46 = vadd.f32 %v773_v45, %v154_v44  ;;  %v3277_v44 = vpop.f32.mrf.mxu1 }
  0xf4   :  { %v775_v50 = vpop.f32.mrf.mxu0 }
  0xf5   :  { %v2544_v47 = vmul.f32 -1.442695, %v778_v46  ;;  %v779_v52 = vadd.f32 %v775_v50, %v156_v51  ;;  %v3279_v45 = vpop.f32.mrf.mxu1  ;;  %v230_v51 = vadd.f32 %v229_v10, %v3176_v42 }
  0xf7   :  { %2756 = vpow2.f32 %v2544_v47  ;;  %v2545_v62 = vmul.f32 -1.442695, %v779_v52  ;;  %v3281_v46 = vpop.f32.mrf.mxu1 }
  0xf8   :  { %2758 = vtanh.f32 %v779_v52 }
  0xf9   :  { %v3283_v47 = vpop.f32.mrf.mxu1 }
  0xfb   :  { %v3285_v48 = vpop.f32.mrf.mxu1 }
  0xfd   :  { %v3287_v50 = vpop.f32.mrf.mxu1 }
 0x104   :  { %v2757_v53 = vpop.eup %2756 }
 0x105   :  { %v783_v54 = vadd.f32 1.0, %v2757_v53  ;;  %v2759_v55 = vpop.eup %2758 }
 0x107   :  { %2760 = vrcp.f32 %v783_v54 }
 0x108   :  { %2762 = vpow2.f32 %v2545_v62 }
 0x114   :  { %v2761_v56 = vpop.eup %2760 }
 0x115   :  { %v797_v57 = vmul.f32 %v2761_v56, %v2759_v55  ;;  %v2763_v63 = vpop.eup %2762  ;;  %v796_v2 = vmul.f32 %v2761_v56, %v794_v0  ;;  %v232_v56 = vadd.f32 %v231_v30, %v3181_v49 }
 0x116   :  { %v790_v1 = vadd.f32 1.0, %v2763_v63 }
 0x117   :  { %799 = vrot.lane.b32.xlu0 %v797_v57, %s2853_s16 }
 0x118   :  { %2764 = vrcp.f32 %v790_v1 }
 0x125   :  { %v2765_v6 = vpop.eup %2764 }
 0x189   :  { %v800_v4 = vpop.permute.xlu0 %799 }
 0x18a   :  { %v802_v5 = vadd.f32 %v800_v4, %v796_v2 }
 0x18c   :  { %2766 = vtanh.f32 %v802_v5 }
 0x199   :  { %v2767_v7 = vpop.eup %2766 }
 0x19a   :  { %v3245_v8 = vmul.f32 %v2767_v7, %v2765_v6 }
 0x19c   :  { %807 = vrot.lane.b32.xlu1 %v3245_v8, %s2853_s16 }
 0x1a0   :  { %815 = vrot.lane.b32.xlu1 %v802_v5, %s2853_s16 }
 0x20e   :  { %v808_v13 = vpop.permute.xlu1 %807 }
 0x20f   :  { %v810_v31 = vmul.f32 %v808_v13, %v805_v9 }
 0x211   :  { %v3255_v34 = vadd.f32 %v812_v12, %v810_v31  ;;  %v2549_v12 = vld [vmem:[%s3717_s1 + $0x4] sm:$0xf] }
 0x212   :  { %v816_v36 = vpop.permute.xlu1 %815  ;;  %v930_v13 = vsub.f32 1.0, %v2549_v12 }
 0x213   :  { %v818_v38 = vmul.f32 %v816_v36, %v805_v9  ;;  %2546 = vmatmul.mubr.msk.f32.vlgmr.msra.gmra.mxu1 %vm704_vm1, %v3255_v34 }
 0x214   :  { %1079 = vmatpush1.msra.mxu1 %v3047_v15  ;;  %1126 = vmatprep.mubr.f32.mxu1 %v2852_v3  ;;  %v931_v30 = vmul.f32 %v930_v13, %v3255_v34  ;;  %v306_v34 = vadd.f32 %v3163_v33, %v3176_v42 }
 0x215   :  { %v820_v39 = vadd.f32 %v819_v32, %v818_v38  ;;  %1080 = vmatprep.subr.mxu1 %v3053_v16 }
 0x216   :  { %1081 = vmatpush1.msra.mxu1 %v3060_v17 }
 0x217   :  { %911 = vrot.lane.b32.xlu0 %v820_v39, %s2853_s16  ;;  %1082 = vmatprep.subr.mxu1 %v3066_v18  ;;  %v938_v32 = vmul.f32 %v930_v13, %v820_v39 }
 0x218   :  { %1083 = vmatpush1.msra.mxu1 %v3073_v19 }
 0x219   :  { %1084 = vmatprep.subr.mxu1 %v3079_v20 }
 0x21a   :  { %1085 = vmatpush1.msra.mxu1 %v3085_v21 }
 0x21b   :  { %1086 = vmatprep.subr.mxu1 %v3091_v22 }
 0x21c   :  { %1087 = vmatpush1.msra.mxu1 %v3097_v23 }
 0x21d   :  { %1088 = vmatprep.subr.mxu1 %v3103_v24 }
 0x21e   :  { %1089 = vmatpush1.msra.mxu1 %v3109_v25 }
 0x21f   :  { %1090 = vmatprep.subr.mxu1 %v3115_v26 }
 0x220   :  { %1091 = vmatpush1.msra.mxu1 %v3121_v27 }
 0x221   :  { %1092 = vmatprep.subr.mxu1 %v3127_v28 }
 0x222   :  { %1093 = vmatpush1.msra.mxu1 %v3133_v29 }
 0x223   :  { %1316 = vmatprep.subr.mxu1 %v3041_v14 }
 0x289   :  { %v912_v1 = vpop.permute.xlu0 %911 }
 0x2d3   :  { %v890_v52 = vpop.f32.mrf.mxu1 }
 0x2d4   :  { %v895_v53 = vadd.f32 %v890_v52, %v230_v51 }
 0x2d5   :  { %v892_v55 = vpop.f32.mrf.mxu1 }
 0x2d6   :  { %v2547_v54 = vmul.f32 -1.442695, %v895_v53  ;;  %v896_v57 = vadd.f32 %v892_v55, %v232_v56  ;;  %v308_v56 = vadd.f32 %v3165_v35, %v3181_v49 }
 0x2d8   :  { %2768 = vpow2.f32 %v2547_v54  ;;  %v2548_v63 = vmul.f32 -1.442695, %v896_v57 }
 0x2d9   :  { %2770 = vtanh.f32 %v896_v57 }
 0x2e5   :  { %v2769_v58 = vpop.eup %2768 }
 0x2e6   :  { %v900_v59 = vadd.f32 1.0, %v2769_v58  ;;  %v2771_v60 = vpop.eup %2770 }
 0x2e8   :  { %2772 = vrcp.f32 %v900_v59 }
 0x2e9   :  { %2774 = vpow2.f32 %v2548_v63 }
 0x2f5   :  { %v2773_v61 = vpop.eup %2772 }
 0x2f6   :  { %v915_v62 = vmul.f32 %v2773_v61, %v2771_v60  ;;  %v2775_v0 = vpop.eup %2774  ;;  %v914_v4 = vmul.f32 %v2773_v61, %v912_v1 }
 0x2f7   :  { %v907_v2 = vadd.f32 1.0, %v2775_v0 }
 0x2f8   :  { %917 = vrot.lane.b32.xlu1 %v915_v62, %s2853_s16 }
 0x2f9   :  { %2776 = vrcp.f32 %v907_v2 }
 0x306   :  { %v2777_v7 = vpop.eup %2776 }
 0x36a   :  { %v918_v5 = vpop.permute.xlu1 %917 }
 0x36b   :  { %v920_v6 = vadd.f32 %v918_v5, %v914_v4 }
 0x36d   :  { %2778 = vtanh.f32 %v920_v6  ;;  %934 = vrot.lane.b32.xlu1 %v920_v6, %s2853_s16 }
 0x37a   :  { %v2779_v9 = vpop.eup %2778 }
 0x37b   :  { %v3293_v11 = vmul.f32 %v2779_v9, %v2777_v7  ;;  %v2553_v9 = vld [vmem:[%s3717_s1 + $0x8] sm:$0xf] }
 0x37d   :  { %926 = vrot.lane.b32.xlu0 %v3293_v11, %s2853_s16 }
 0x3df   :  { %v935_v31 = vpop.permute.xlu1 %934 }
 0x3e0   :  { %v937_v36 = vmul.f32 %v2549_v12, %v935_v31 }
 0x3e2   :  { %v939_v38 = vadd.f32 %v938_v32, %v937_v36 }
 0x3e4   :  { %1030 = vrot.lane.b32.xlu0 %v939_v38, %s2853_s16 }
 0x3ef   :  { %v927_v10 = vpop.permute.xlu0 %926 }
 0x3f0   :  { %v929_v51 = vmul.f32 %v2549_v12, %v927_v10  ;;  %v1049_v12 = vsub.f32 1.0, %v2553_v9 }
 0x3f2   :  { %v932_v52 = vadd.f32 %v931_v30, %v929_v51  ;;  %v1057_v31 = vmul.f32 %v1049_v12, %v939_v38  ;;  %v382_v38 = vadd.f32 %v3277_v44, %v3176_v42 }
 0x3f4   :  { %2550 = vmatmul.mubr.msk.f32.vlgmr.msra.gmra.mxu0 %vm704_vm1, %v932_v52  ;;  %v1050_v30 = vmul.f32 %v1049_v12, %v932_v52 }
 0x3f5   :  { %1198 = vmatpush1.msra.mxu0 %v3047_v15  ;;  %1245 = vmatprep.mubr.f32.mxu0 %v2852_v3 }
 0x3f6   :  { %1199 = vmatprep.subr.mxu0 %v3053_v16 }
 0x3f7   :  { %1200 = vmatpush1.msra.mxu0 %v3060_v17 }
 0x3f8   :  { %1201 = vmatprep.subr.mxu0 %v3066_v18 }
 0x3f9   :  { %1202 = vmatpush1.msra.mxu0 %v3073_v19 }
 0x3fa   :  { %1203 = vmatprep.subr.mxu0 %v3079_v20 }
 0x3fb   :  { %1204 = vmatpush1.msra.mxu0 %v3085_v21 }
 0x3fc   :  { %1205 = vmatprep.subr.mxu0 %v3091_v22 }
 0x3fd   :  { %1206 = vmatpush1.msra.mxu0 %v3097_v23 }
 0x3fe   :  { %1207 = vmatprep.subr.mxu0 %v3103_v24 }
 0x3ff   :  { %1208 = vmatpush1.msra.mxu0 %v3109_v25 }
 0x400   :  { %1209 = vmatprep.subr.mxu0 %v3115_v26 }
 0x401   :  { %1210 = vmatpush1.msra.mxu0 %v3121_v27 }
 0x402   :  { %1211 = vmatprep.subr.mxu0 %v3127_v28 }
 0x403   :  { %1212 = vmatpush1.msra.mxu0 %v3133_v29 }
 0x404   :  { %1435 = vmatprep.subr.mxu0 %v3041_v14 }
 0x456   :  { %v1031_v0 = vpop.permute.xlu0 %1030 }
 0x4b4   :  { %v1009_v39 = vpop.f32.mrf.mxu0 }
 0x4b5   :  { %v1014_v53 = vadd.f32 %v1009_v39, %v306_v34 }
 0x4b6   :  { %v1011_v55 = vpop.f32.mrf.mxu0 }
 0x4b7   :  { %v2551_v54 = vmul.f32 -1.442695, %v1014_v53  ;;  %v1015_v57 = vadd.f32 %v1011_v55, %v308_v56  ;;  %v384_v55 = vadd.f32 %v3279_v45, %v3181_v49 }
 0x4b9   :  { %2780 = vpow2.f32 %v2551_v54  ;;  %v2552_v63 = vmul.f32 -1.442695, %v1015_v57 }
 0x4ba   :  { %2782 = vtanh.f32 %v1015_v57 }
 0x4c6   :  { %v2781_v58 = vpop.eup %2780 }
 0x4c7   :  { %v1019_v59 = vadd.f32 1.0, %v2781_v58  ;;  %v2783_v60 = vpop.eup %2782 }
 0x4c9   :  { %2784 = vrcp.f32 %v1019_v59 }
 0x4ca   :  { %2786 = vpow2.f32 %v2552_v63 }
 0x4d6   :  { %v2785_v61 = vpop.eup %2784 }
 0x4d7   :  { %v1034_v62 = vmul.f32 %v2785_v61, %v2783_v60  ;;  %v2787_v33 = vpop.eup %2786  ;;  %v1033_v2 = vmul.f32 %v2785_v61, %v1031_v0 }
 0x4d8   :  { %v1026_v1 = vadd.f32 1.0, %v2787_v33 }
 0x4d9   :  { %1036 = vrot.lane.b32.xlu1 %v1034_v62, %s2853_s16 }
 0x4da   :  { %2788 = vrcp.f32 %v1026_v1 }
 0x4e7   :  { %v2789_v35 = vpop.eup %2788 }
 0x54b   :  { %v1037_v4 = vpop.permute.xlu1 %1036 }
 0x54c   :  { %v1039_v5 = vadd.f32 %v1037_v4, %v1033_v2 }
 0x54e   :  { %2790 = vtanh.f32 %v1039_v5  ;;  %1053 = vrot.lane.b32.xlu1 %v1039_v5, %s2853_s16  ;;  %v2557_v5 = vld [vmem:[%s3717_s1 + $0xc] sm:$0xf] }
 0x55b   :  { %v2791_v6 = vpop.eup %2790 }
 0x55c   :  { %v3326_v7 = vmul.f32 %v2791_v6, %v2789_v35  ;;  %v1168_v35 = vsub.f32 1.0, %v2557_v5 }
 0x55e   :  { %1045 = vrot.lane.b32.xlu0 %v3326_v7, %s2853_s16 }
 0x5c0   :  { %v1054_v13 = vpop.permute.xlu1 %1053 }
 0x5c1   :  { %v1056_v32 = vmul.f32 %v2553_v9, %v1054_v13 }
 0x5c3   :  { %v1058_v36 = vadd.f32 %v1057_v31, %v1056_v32 }
 0x5c5   :  { %1149 = vrot.lane.b32.xlu0 %v1058_v36, %s2853_s16 }
 0x5d0   :  { %v1046_v10 = vpop.permute.xlu0 %1045 }
 0x5d1   :  { %v1048_v51 = vmul.f32 %v2553_v9, %v1046_v10  ;;  %v1176_v9 = vmul.f32 %v1168_v35, %v1058_v36  ;;  %v458_v36 = vadd.f32 %v3167_v37, %v3176_v42 }
 0x5d3   :  { %v1051_v34 = vadd.f32 %v1050_v30, %v1048_v51 }
 0x5d5   :  { %2554 = vmatmul.mubr.msk.f32.vlgmr.msra.gmra.mxu1 %vm704_vm1, %v1051_v34  ;;  %v1169_v32 = vmul.f32 %v1168_v35, %v1051_v34 }
 0x5d6   :  { %1317 = vmatpush1.msra.mxu1 %v3047_v15  ;;  %1364 = vmatprep.mubr.f32.mxu1 %v2852_v3 }
 0x5d7   :  { %1318 = vmatprep.subr.mxu1 %v3053_v16 }
 0x5d8   :  { %1319 = vmatpush1.msra.mxu1 %v3060_v17 }
 0x5d9   :  { %1320 = vmatprep.subr.mxu1 %v3066_v18 }
 0x5da   :  { %1321 = vmatpush1.msra.mxu1 %v3073_v19 }
 0x5db   :  { %1322 = vmatprep.subr.mxu1 %v3079_v20 }
 0x5dc   :  { %1323 = vmatpush1.msra.mxu1 %v3085_v21 }
 0x5dd   :  { %1324 = vmatprep.subr.mxu1 %v3091_v22 }
 0x5de   :  { %1325 = vmatpush1.msra.mxu1 %v3097_v23 }
 0x5df   :  { %1326 = vmatprep.subr.mxu1 %v3103_v24 }
 0x5e0   :  { %1327 = vmatpush1.msra.mxu1 %v3109_v25 }
 0x5e1   :  { %1328 = vmatprep.subr.mxu1 %v3115_v26 }
 0x5e2   :  { %1329 = vmatpush1.msra.mxu1 %v3121_v27 }
 0x5e3   :  { %1330 = vmatprep.subr.mxu1 %v3127_v28 }
 0x5e4   :  { %1331 = vmatpush1.msra.mxu1 %v3133_v29 }
 0x5e5   :  { %1554 = vmatprep.subr.mxu1 %v3041_v14 }
 0x637   :  { %v1150_v62 = vpop.permute.xlu0 %1149 }
 0x695   :  { %v1128_v52 = vpop.f32.mrf.mxu1 }
 0x696   :  { %v1133_v39 = vadd.f32 %v1128_v52, %v382_v38 }
 0x697   :  { %v1130_v54 = vpop.f32.mrf.mxu1 }
 0x698   :  { %v2555_v53 = vmul.f32 -1.442695, %v1133_v39  ;;  %v1134_v56 = vadd.f32 %v1130_v54, %v384_v55  ;;  %v460_v39 = vadd.f32 %v3172_v40, %v3181_v49 }
 0x69a   :  { %2792 = vpow2.f32 %v2555_v53  ;;  %v2556_v14 = vmul.f32 -1.442695, %v1134_v56 }
 0x69b   :  { %2794 = vtanh.f32 %v1134_v56 }
 0x6a7   :  { %v2793_v57 = vpop.eup %2792 }
 0x6a8   :  { %v1138_v58 = vadd.f32 1.0, %v2793_v57  ;;  %v2795_v59 = vpop.eup %2794 }
 0x6aa   :  { %2796 = vrcp.f32 %v1138_v58 }
 0x6ab   :  { %2798 = vpow2.f32 %v2556_v14 }
 0x6b7   :  { %v2797_v60 = vpop.eup %2796 }
 0x6b8   :  { %v1153_v61 = vmul.f32 %v2797_v60, %v2795_v59  ;;  %v2799_v44 = vpop.eup %2798  ;;  %v1152_v33 = vmul.f32 %v2797_v60, %v1150_v62 }
 0x6b9   :  { %v1145_v63 = vadd.f32 1.0, %v2799_v44 }
 0x6ba   :  { %1155 = vrot.lane.b32.xlu1 %v1153_v61, %s2853_s16 }
 0x6bb   :  { %2800 = vrcp.f32 %v1145_v63 }
 0x6c8   :  { %v2801_v45 = vpop.eup %2800 }
 0x72c   :  { %v1156_v0 = vpop.permute.xlu1 %1155 }
 0x72d   :  { %v1158_v1 = vadd.f32 %v1156_v0, %v1152_v33  ;;  %v2561_v0 = vld [vmem:[%s3717_s1 + $0x10] sm:$0xf] }
 0x72f   :  { %2802 = vtanh.f32 %v1158_v1  ;;  %1172 = vrot.lane.b32.xlu1 %v1158_v1, %s2853_s16  ;;  %v1287_v1 = vsub.f32 1.0, %v2561_v0 }
 0x73c   :  { %v2803_v2 = vpop.eup %2802 }
 0x73d   :  { %v3358_v4 = vmul.f32 %v2803_v2, %v2801_v45 }
 0x73f   :  { %1164 = vrot.lane.b32.xlu0 %v3358_v4, %s2853_s16 }
 0x7a1   :  { %v1173_v6 = vpop.permute.xlu1 %1172 }
 0x7a2   :  { %v1175_v12 = vmul.f32 %v2557_v5, %v1173_v6 }
 0x7a4   :  { %v1177_v13 = vadd.f32 %v1176_v9, %v1175_v12 }
 0x7a6   :  { %1268 = vrot.lane.b32.xlu0 %v1177_v13, %s2853_s16  ;;  %v1295_v2 = vmul.f32 %v1287_v1, %v1177_v13 }
 0x7b1   :  { %v1165_v31 = vpop.permute.xlu0 %1164 }
 0x7b2   :  { %v1167_v10 = vmul.f32 %v2557_v5, %v1165_v31 }
 0x7b4   :  { %v1170_v30 = vadd.f32 %v1169_v32, %v1167_v10 }
 0x7b6   :  { %2558 = vmatmul.mubr.msk.f32.vlgmr.msra.gmra.mxu0 %vm704_vm1, %v1170_v30  ;;  %v1288_v9 = vmul.f32 %v1287_v1, %v1170_v30 }
 0x7b7   :  { %1436 = vmatpush1.msra.mxu0 %v3047_v15  ;;  %1483 = vmatprep.mubr.f32.mxu0 %v2852_v3 }
 0x7b8   :  { %1437 = vmatprep.subr.mxu0 %v3053_v16 }
 0x7b9   :  { %1438 = vmatpush1.msra.mxu0 %v3060_v17 }
 0x7ba   :  { %1439 = vmatprep.subr.mxu0 %v3066_v18 }
 0x7bb   :  { %1440 = vmatpush1.msra.mxu0 %v3073_v19 }
 0x7bc   :  { %1441 = vmatprep.subr.mxu0 %v3079_v20 }
 0x7bd   :  { %1442 = vmatpush1.msra.mxu0 %v3085_v21 }
 0x7be   :  { %1443 = vmatprep.subr.mxu0 %v3091_v22 }
 0x7bf   :  { %1444 = vmatpush1.msra.mxu0 %v3097_v23 }
 0x7c0   :  { %1445 = vmatprep.subr.mxu0 %v3103_v24 }
 0x7c1   :  { %1446 = vmatpush1.msra.mxu0 %v3109_v25 }
 0x7c2   :  { %1447 = vmatprep.subr.mxu0 %v3115_v26 }
 0x7c3   :  { %1448 = vmatpush1.msra.mxu0 %v3121_v27 }
 0x7c4   :  { %1449 = vmatprep.subr.mxu0 %v3127_v28 }
 0x7c5   :  { %1450 = vmatpush1.msra.mxu0 %v3133_v29 }
 0x7c6   :  { %2650 = vmatprep.subr.mxu0 %v2852_v3 }
 0x818   :  { %v1269_v60 = vpop.permute.xlu0 %1268 }
 0x876   :  { %v1247_v51 = vpop.f32.mrf.mxu0 }
 0x877   :  { %v1252_v34 = vadd.f32 %v1247_v51, %v458_v36  ;;  %v2565_v51 = vld [vmem:[%s3717_s1 + $0x14] sm:$0xf] }
 0x878   :  { %v1249_v52 = vpop.f32.mrf.mxu0 }
 0x879   :  { %v2559_v38 = vmul.f32 -1.442695, %v1252_v34  ;;  %v1253_v53 = vadd.f32 %v1249_v52, %v460_v39  ;;  %v1406_v34 = vsub.f32 1.0, %v2565_v51 }
 0x87b   :  { %2804 = vpow2.f32 %v2559_v38  ;;  %v2560_v59 = vmul.f32 -1.442695, %v1253_v53 }
 0x87c   :  { %2806 = vtanh.f32 %v1253_v53 }
 0x888   :  { %v2805_v54 = vpop.eup %2804 }
 0x889   :  { %v1257_v55 = vadd.f32 1.0, %v2805_v54  ;;  %v2807_v56 = vpop.eup %2806 }
 0x88b   :  { %2808 = vrcp.f32 %v1257_v55 }
 0x88c   :  { %2810 = vpow2.f32 %v2560_v59 }
 0x898   :  { %v2809_v57 = vpop.eup %2808 }
 0x899   :  { %v1272_v58 = vmul.f32 %v2809_v57, %v2807_v56  ;;  %v2811_v37 = vpop.eup %2810  ;;  %v1271_v14 = vmul.f32 %v2809_v57, %v1269_v60 }
 0x89a   :  { %v1264_v61 = vadd.f32 1.0, %v2811_v37 }
 0x89b   :  { %1274 = vrot.lane.b32.xlu1 %v1272_v58, %s2853_s16  ;;  %v610_v58 = vadd.f32 %v3174_v41, %v3176_v42 }
 0x89c   :  { %2812 = vrcp.f32 %v1264_v61 }
 0x8a9   :  { %v2813_v40 = vpop.eup %2812 }
 0x90d   :  { %v1275_v44 = vpop.permute.xlu1 %1274 }
 0x90e   :  { %v1277_v62 = vadd.f32 %v1275_v44, %v1271_v14  ;;  %v612_v14 = vadd.f32 %v3178_v43, %v3181_v49 }
 0x910   :  { %2814 = vtanh.f32 %v1277_v62  ;;  %1291 = vrot.lane.b32.xlu1 %v1277_v62, %s2853_s16 }
 0x91d   :  { %v2815_v63 = vpop.eup %2814 }
 0x91e   :  { %v3390_v33 = vmul.f32 %v2815_v63, %v2813_v40 }
 0x920   :  { %1283 = vrot.lane.b32.xlu0 %v3390_v33, %s2853_s16 }
 0x982   :  { %v1292_v45 = vpop.permute.xlu1 %1291 }
 0x983   :  { %v1294_v5 = vmul.f32 %v2561_v0, %v1292_v45 }
 0x985   :  { %v1296_v35 = vadd.f32 %v1295_v2, %v1294_v5  ;;  %v2854_v2 = vmov 0  }
 0x986   :  { %2754 = vset.pattern.permute.xlu0 %v2854_v2  ;;  %2755 = vset.pattern.permute.xlu1 %v2854_v2 }
 0x987   :  { %1387 = vrot.lane.b32.xlu0 %v1296_v35, %s2853_s16  ;;  %v1414_v52 = vmul.f32 %v1406_v34, %v1296_v35 }
 0x992   :  { %v1284_v6 = vpop.permute.xlu0 %1283 }
 0x993   :  { %v1286_v12 = vmul.f32 %v2561_v0, %v1284_v6 }
 0x995   :  { %v1289_v31 = vadd.f32 %v1288_v9, %v1286_v12 }
 0x997   :  { %2562 = vmatmul.mubr.msk.f32.vlgmr.msra.gmra.mxu1 %vm704_vm1, %v1289_v31  ;;  %v1407_v55 = vmul.f32 %v1406_v34, %v1289_v31 }
 0x998   :  { %1555 = vmatpush1.msra.mxu1 %v3047_v15  ;;  %1602 = vmatprep.mubr.f32.mxu1 %v2852_v3  ;;  %v534_v15 = vadd.f32 %v3281_v46, %v3176_v42 }
 0x999   :  { %1556 = vmatprep.subr.mxu1 %v3053_v16 }
 0x99a   :  { %1557 = vmatpush1.msra.mxu1 %v3060_v17 }
 0x99b   :  { %1558 = vmatprep.subr.mxu1 %v3066_v18 }
 0x99c   :  { %1559 = vmatpush1.msra.mxu1 %v3073_v19 }
 0x99d   :  { %1560 = vmatprep.subr.mxu1 %v3079_v20  ;;  %v536_v20 = vadd.f32 %v3283_v47, %v3181_v49 }
 0x99e   :  { %1561 = vmatpush1.msra.mxu1 %v3085_v21 }
 0x99f   :  { %1562 = vmatprep.subr.mxu1 %v3091_v22 }
 0x9a0   :  { %1563 = vmatpush1.msra.mxu1 %v3097_v23 }
 0x9a1   :  { %1564 = vmatprep.subr.mxu1 %v3103_v24 }
 0x9a2   :  { %1565 = vmatpush1.msra.mxu1 %v3109_v25 }
 0x9a3   :  { %1566 = vmatprep.subr.mxu1 %v3115_v26 }
 0x9a4   :  { %1567 = vmatpush1.msra.mxu1 %v3121_v27 }
 0x9a5   :  { %1568 = vmatprep.subr.mxu1 %v3127_v28 }
 0x9a6   :  { %1569 = vmatpush1.msra.mxu1 %v3133_v29 }
 0x9a7   :  { %2661 = vmatprep.subr.mxu1 %v2852_v3 }
 0x9f9   :  { %v1388_v29 = vpop.permute.xlu0 %1387 }
 0xa57   :  { %v1366_v16 = vpop.f32.mrf.mxu1 }
 0xa58   :  { %v1371_v17 = vadd.f32 %v1366_v16, %v534_v15  ;;  %v2569_v16 = vld [vmem:[%s3717_s1 + $0x18] sm:$0xf]  ;;  %s2855_s1 = smov 96  }
 0xa59   :  { %v1368_v19 = vpop.f32.mrf.mxu1 }
 0xa5a   :  { %v2563_v18 = vmul.f32 -1.442695, %v1371_v17  ;;  %v1372_v21 = vadd.f32 %v1368_v19, %v536_v20  ;;  %v1525_v17 = vsub.f32 1.0, %v2569_v16 }
 0xa5c   :  { %2816 = vpow2.f32 %v2563_v18  ;;  %v2564_v27 = vmul.f32 -1.442695, %v1372_v21 }
 0xa5d   :  { %2818 = vtanh.f32 %v1372_v21 }
 0xa69   :  { %v2817_v22 = vpop.eup %2816 }
 0xa6a   :  { %v1376_v23 = vadd.f32 1.0, %v2817_v22  ;;  %v2819_v24 = vpop.eup %2818  ;;  %v1647_v22 = vld [vmem:[%s3718_s2] sm:$0xf] }
 0xa6c   :  { %2820 = vrcp.f32 %v1376_v23  ;;  %v2579_v23 = vld [vmem:[%s3718_s2 + $0x8] sm:$0xf] }
 0xa6d   :  { %2822 = vpow2.f32 %v2564_v27  ;;  %v2587_v27 = vld [vmem:[%s3718_s2 + $0x10] sm:$0xf] }
 0xa79   :  { %v2821_v25 = vpop.eup %2820 }
 0xa7a   :  { %v1391_v26 = vmul.f32 %v2821_v25, %v2819_v24  ;;  %v2823_v28 = vpop.eup %2822  ;;  %v1390_v13 = vmul.f32 %v2821_v25, %v1388_v29  ;;  %v2578_v29 = vld [vmem:[%s3719_s3 + $0x4] sm:$0xf] }
 0xa7b   :  { %v1383_v46 = vadd.f32 1.0, %v2823_v28 }
 0xa7c   :  { %1393 = vrot.lane.b32.xlu1 %v1391_v26, %s2853_s16 }
 0xa7d   :  { %2824 = vrcp.f32 %v1383_v46  ;;  %v2586_v46 = vld [vmem:[%s3719_s3 + $0xc] sm:$0xf] }
 0xa8a   :  { %v2825_v47 = vpop.eup %2824 }
 0xaee   :  { %v1394_v32 = vpop.permute.xlu1 %1393 }
 0xaef   :  { %v1396_v10 = vadd.f32 %v1394_v32, %v1390_v13  ;;  %v2591_v13 = vld [vmem:[%s3718_s2 + $0x14] sm:$0xf] }
 0xaf0   :  { %v2594_v32 = vld [vmem:[%s3719_s3 + $0x14] sm:$0xf] }
 0xaf1   :  { %2826 = vtanh.f32 %v1396_v10  ;;  %1410 = vrot.lane.b32.xlu1 %v1396_v10, %s2853_s16  ;;  %v2599_v10 = vld [vmem:[%s3718_s2 + $0x1c] sm:$0xf] }
 0xafe   :  { %v2827_v30 = vpop.eup %2826 }
 0xaff   :  { %v3422_v36 = vmul.f32 %v2827_v30, %v2825_v47 }
 0xb01   :  { %1402 = vrot.lane.b32.xlu0 %v3422_v36, %s2853_s16 }
 0xb63   :  { %v1411_v38 = vpop.permute.xlu1 %1410 }
 0xb64   :  { %v1413_v39 = vmul.f32 %v2565_v51, %v1411_v38 }
 0xb66   :  { %v1415_v53 = vadd.f32 %v1414_v52, %v1413_v39  ;;  %v686_v39 = vadd.f32 %v3285_v48, %v3176_v42  ;;  %v2575_v42 = vld [vmem:[%s3718_s2 + $0x4] sm:$0xf]  ;;  %v1737_v48 = vld [vmem:[%s3719_s3] sm:$0xf] }
 0xb68   :  { %1506 = vrot.lane.b32.xlu0 %v1415_v53, %s2853_s16  ;;  %v1533_v19 = vmul.f32 %v1525_v17, %v1415_v53 }
 0xb73   :  { %v1403_v54 = vpop.permute.xlu0 %1402 }
 0xb74   :  { %v1405_v56 = vmul.f32 %v2565_v51, %v1403_v54 }
 0xb76   :  { %v1408_v57 = vadd.f32 %v1407_v55, %v1405_v56 }
 0xb78   :  { %2566 = vmatmul.mubr.msk.f32.vlgmr.msra.gmra.mxu0 %vm704_vm1, %v1408_v57  ;;  %v1526_v25 = vmul.f32 %v1525_v17, %v1408_v57  ;;  %v688_v57 = vadd.f32 %v3287_v50, %v3181_v49  ;;  %v2583_v49 = vld [vmem:[%s3718_s2 + $0xc] sm:$0xf]  ;;  %v3502_v50 = vld [vmem:[%s3720_s9 + $0x18] sm:$0xff] }
 0xb79   :  { %2651 = vmatpush3.msra.mxu0 %v3502_v50  ;;  %2658 = vmatprep.mubr.msk.f32.mxu0 %vm2856_vm2, %v2852_v3 }
 0xb7a   :  { %2652 = vmatprep.subr.mxu0 %v2852_v3 }
 0xbda   :  { %v1507_v5 = vpop.permute.xlu0 %1506 }
 0xc38   :  { %v1485_v59 = vpop.f32.mrf.mxu0 }
 0xc39   :  { %v1490_v37 = vadd.f32 %v1485_v59, %v610_v58 }
 0xc3a   :  { %v1487_v61 = vpop.f32.mrf.mxu0 }
 0xc3b   :  { %v2567_v60 = vmul.f32 -1.442695, %v1490_v37  ;;  %v1491_v44 = vadd.f32 %v1487_v61, %v612_v14 }
 0xc3d   :  { %2828 = vpow2.f32 %v2567_v60  ;;  %v2568_v45 = vmul.f32 -1.442695, %v1491_v44 }
 0xc3e   :  { %2830 = vtanh.f32 %v1491_v44  ;;  %v3507_v44 = vld [vmem:[%s3720_s9 + $0x10] sm:$0xff] }
 0xc3f   :  { %2653 = vmatpush3.msra.mxu0 %v3507_v44 }
 0xc40   :  { %2654 = vmatprep.subr.mxu0 %v2852_v3 }
 0xc4a   :  { %v2829_v62 = vpop.eup %2828 }
 0xc4b   :  { %v1495_v40 = vadd.f32 1.0, %v2829_v62  ;;  %v2831_v63 = vpop.eup %2830  ;;  %v3515_v62 = vld [vmem:[%s3720_s9 + $0x8] sm:$0xff] }
 0xc4c   :  { %2655 = vmatpush3.msra.mxu0 %v3515_v62 }
 0xc4d   :  { %2832 = vrcp.f32 %v1495_v40  ;;  %2656 = vmatprep.subr.mxu0 %v2852_v3 }
 0xc4e   :  { %2834 = vpow2.f32 %v2568_v45 }
 0xc5a   :  { %v2833_v0 = vpop.eup %2832 }
 0xc5b   :  { %v1510_v1 = vmul.f32 %v2833_v0, %v2831_v63  ;;  %v2835_v41 = vpop.eup %2834  ;;  %v1509_v6 = vmul.f32 %v2833_v0, %v1507_v5  ;;  %v3531_v5 = vld [vmem:[%s3720_s9] sm:$0xff] }
 0xc5c   :  { %v1502_v35 = vadd.f32 1.0, %v2835_v41  ;;  %2657 = vmatpush3.msra.mxu0 %v3531_v5 }
 0xc5d   :  { %1512 = vrot.lane.b32.xlu1 %v1510_v1, %s2853_s16  ;;  %2672 = vmatprep.subr.mxu0 %v2852_v3 }
 0xc5e   :  { %2836 = vrcp.f32 %v1502_v35 }
 0xc6b   :  { %v2837_v12 = vpop.eup %2836 }
 0xccf   :  { %v1513_v43 = vpop.permute.xlu1 %1512 }
 0xcd0   :  { %v1515_v9 = vadd.f32 %v1513_v43, %v1509_v6 }
 0xcd2   :  { %2838 = vtanh.f32 %v1515_v9  ;;  %1529 = vrot.lane.b32.xlu1 %v1515_v9, %s2853_s16 }
 0xcdf   :  { %v2839_v31 = vpop.eup %2838 }
 0xce0   :  { %v3437_v15 = vmul.f32 %v2839_v31, %v2837_v12 }
 0xce2   :  { %1521 = vrot.lane.b32.xlu0 %v3437_v15, %s2853_s16 }
 0xd44   :  { %v1530_v18 = vpop.permute.xlu1 %1529 }
 0xd45   :  { %v1532_v20 = vmul.f32 %v2569_v16, %v1530_v18 }
 0xd47   :  { %v1534_v21 = vadd.f32 %v1533_v19, %v1532_v20  ;;  %v2582_v19 = vld [vmem:[%s3719_s3 + $0x8] sm:$0xf] }
 0xd49   :  { %1625 = vrot.lane.b32.xlu0 %v1534_v21, %s2853_s16 }
 0xd4d   :  { %1650 = vperm.xlu0 %2754, %v1647_v22  }
 0xd51   :  { %1851 = vperm.xlu0 %2754, %v2579_v23   ;;  %v2595_v23 = vld [vmem:[%s3718_s2 + $0x18] sm:$0xf] }
 0xd54   :  { %v1522_v24 = vpop.permute.xlu0 %1521 }
 0xd55   :  { %v1524_v26 = vmul.f32 %v2569_v16, %v1522_v24  ;;  %1843 = vrot.lane.b32.xlu0 %v3422_v36, %s2855_s1  ;;  %v2598_v24 = vld [vmem:[%s3719_s3 + $0x18] sm:$0xf] }
 0xd57   :  { %v1527_v28 = vadd.f32 %v1526_v25, %v1524_v26 }
 0xd59   :  { %2047 = vperm.xlu0 %2754, %v2587_v27   ;;  %2570 = vmatmul.mubr.msk.f32.vlgmr.msra.gmra.mxu1 %vm704_vm1, %v1527_v28 }
 0xd5a   :  { %2662 = vmatpush3.msra.mxu1 %v3502_v50  ;;  %2669 = vmatprep.mubr.msk.f32.mxu1 %vm2856_vm2, %v2852_v3 }
 0xd5b   :  { %2663 = vmatprep.subr.mxu1 %v2852_v3 }
 0xd5c   :  { %2664 = vmatpush3.msra.mxu1 %v3507_v44 }
 0xd5d   :  { %1838 = vperm.xlu0 %2754, %v2578_v29   ;;  %2665 = vmatprep.subr.mxu1 %v2852_v3 }
 0xd5e   :  { %2666 = vmatpush3.msra.mxu1 %v3515_v62 }
 0xd5f   :  { %2667 = vmatprep.subr.mxu1 %v2852_v3 }
 0xd60   :  { %2668 = vmatpush3.msra.mxu1 %v3531_v5 }
 0xd61   :  { %1941 = vrot.lane.b32.xlu0 %v3390_v33, %s2855_s1  ;;  %2683 = vmatprep.subr.mxu1 %v2852_v3 }
 0xd65   :  { %2034 = vperm.xlu0 %2754, %v2586_v46  }
 0xd69   :  { %2145 = vperm.xlu0 %2754, %v2591_v13  }
 0xd6d   :  { %2230 = vperm.xlu0 %2754, %v2594_v32  }
 0xd71   :  { %2235 = vrot.lane.b32.xlu0 %v3293_v11, %s2855_s1 }
 0xd75   :  { %2341 = vperm.xlu0 %2754, %v2599_v10  }
 0xd79   :  { %2333 = vrot.lane.b32.xlu0 %v3245_v8, %s2855_s1 }
 0xdbb   :  { %v1626_v47 = vpop.permute.xlu0 %1625 }
 0xdc8   :  { %v3478_v30 = vpop.permute.xlu0 %1650 }
 0xdcc   :  { %v1852_v51 = vpop.permute.xlu0 %1851 }
 0xdd0   :  { %v1844_v34 = vpop.permute.xlu0 %1843 }
 0xdd1   :  { %v1846_v38 = vadd.f32 %v1844_v34, %v3326_v7 }
 0xdd3   :  { %v3481_v52 = vmul.f32 %v1852_v51, %v1846_v38 }
 0xdd4   :  { %v3526_v2 = vpop.permute.xlu0 %2047 }
 0xdd8   :  { %v1839_v35 = vpop.permute.xlu0 %1838 }
 0xddc   :  { %v1942_v17 = vpop.permute.xlu0 %1941 }
 0xddd   :  { %v1944_v21 = vadd.f32 %v1942_v17, %v3358_v4 }
 0xde0   :  { %v2035_v25 = vpop.permute.xlu0 %2034 }
 0xde4   :  { %v2146_v26 = vpop.permute.xlu0 %2145 }
 0xde8   :  { %v2231_v27 = vpop.permute.xlu0 %2230 }
 0xdec   :  { %v2236_v28 = vpop.permute.xlu0 %2235 }
 0xdf0   :  { %v2342_v29 = vpop.permute.xlu0 %2341 }
 0xdf4   :  { %v2334_v13 = vpop.permute.xlu0 %2333 }
 0xe19   :  { %v1604_v53 = vpop.f32.mrf.mxu1 }
 0xe1a   :  { %v1609_v54 = vadd.f32 %v1604_v53, %v686_v39 }
 0xe1b   :  { %v1606_v56 = vpop.f32.mrf.mxu1 }
 0xe1c   :  { %v2571_v55 = vmul.f32 -1.442695, %v1609_v54  ;;  %v1610_v58 = vadd.f32 %v1606_v56, %v688_v57 }
 0xe1e   :  { %2840 = vpow2.f32 %v2571_v55  ;;  %v2572_v40 = vmul.f32 -1.442695, %v1610_v58 }
 0xe1f   :  { %2842 = vtanh.f32 %v1610_v58 }
 0xe2b   :  { %v2841_v59 = vpop.eup %2840 }
 0xe2c   :  { %v1614_v37 = vadd.f32 1.0, %v2841_v59  ;;  %v2843_v60 = vpop.eup %2842  ;;  %v2238_v59 = vadd.f32 %v2236_v28, %v3437_v15 }
 0xe2e   :  { %2844 = vrcp.f32 %v1614_v37 }
 0xe2f   :  { %2846 = vpow2.f32 %v2572_v40 }
 0xe3b   :  { %v2845_v61 = vpop.eup %2844 }
 0xe3c   :  { %v1629_v14 = vmul.f32 %v2845_v61, %v2843_v60  ;;  %v2847_v63 = vpop.eup %2846  ;;  %v1628_v1 = vmul.f32 %v2845_v61, %v1626_v47 }
 0xe3d   :  { %v1621_v0 = vadd.f32 1.0, %v2847_v63 }
 0xe3e   :  { %1631 = vrot.lane.b32.xlu1 %v1629_v14, %s2853_s16 }
 0xe3f   :  { %2848 = vrcp.f32 %v1621_v0 }
 0xe42   :  { %1753 = vperm.xlu1 %2755, %v2575_v42  }
 0xe46   :  { %1745 = vrot.lane.b32.xlu1 %v3437_v15, %s2855_s1 }
 0xe4a   :  { %1949 = vperm.xlu1 %2755, %v2583_v49  }
 0xe4c   :  { %v2849_v43 = vpop.eup %2848 }
 0xe4e   :  { %1740 = vperm.xlu1 %2755, %v1737_v48  }
 0xeb0   :  { %v1632_v45 = vpop.permute.xlu1 %1631 }
 0xeb1   :  { %v1634_v41 = vadd.f32 %v1632_v45, %v1628_v1 }
 0xeb3   :  { %2850 = vtanh.f32 %v1634_v41 }
 0xebd   :  { %v1754_v6 = vpop.permute.xlu1 %1753 }
 0xec0   :  { %v2851_v9 = vpop.eup %2850 }
 0xec1   :  { %v1746_v12 = vpop.permute.xlu1 %1745  ;;  %v3541_v31 = vmul.f32 %v2851_v9, %v2849_v43 }
 0xec2   :  { %v1748_v16 = vadd.f32 %v1746_v12, %v3293_v11  ;;  %v2590_v11 = vld [vmem:[%s3719_s3 + $0x10] sm:$0xf]  ;;  %v2434_v12 = vld [vmem:[%s3721_s11 + $0x18] sm:$0xff] }
 0xec3   :  { %1643 = vrot.lane.b32.xlu1 %v3541_v31, %s2855_s1  ;;  %v2336_v49 = vadd.f32 %v2334_v13, %v3541_v31  ;;  %v2433_v31 = vld [vmem:[%s3721_s11 + $0x10] sm:$0xff] }
 0xec4   :  { %v1756_v18 = vmul.f32 %v1754_v6, %v1748_v16  ;;  %v2432_v16 = vld [vmem:[%s3721_s11 + $0x8] sm:$0xff] }
 0xec5   :  { %v1950_v20 = vpop.permute.xlu1 %1949  ;;  %v2344_v45 = vmul.f32 %v2342_v29, %v2336_v49 }
 0xec6   :  { %1758 = vrot.lane.b32.xlu0 %v1756_v18, %s2853_s16  ;;  %v1952_v22 = vmul.f32 %v1950_v20, %v1944_v21  ;;  %v1841_v51 = vmul.f32 %v1839_v35, %v1756_v18  ;;  %v2431_v18 = vld [vmem:[%s3721_s11] sm:$0xff] }
 0xec7   :  { %1936 = vperm.xlu1 %2755, %v2582_v19  }
 0xec8   :  { %v2037_v53 = vmul.f32 %v2035_v25, %v1952_v22 }
 0xec9   :  { %v1741_v46 = vpop.permute.xlu1 %1740 }
 0xeca   :  { %1954 = vrot.lane.b32.xlu0 %v1952_v22, %s2853_s16 }
 0xecb   :  { %2039 = vrot.lane.b32.xlu1 %v3358_v4, %s2855_s1  ;;  %v2602_v4 = vld [vmem:[%s3719_s3 + $0x1c] sm:$0xf] }
 0xecf   :  { %2132 = vperm.xlu1 %2755, %v2590_v11  }
 0xed3   :  { %2243 = vperm.xlu1 %2755, %v2595_v23  }
 0xed7   :  { %2137 = vrot.lane.b32.xlu1 %v3326_v7, %s2855_s1 }
 0xedb   :  { %2328 = vperm.xlu1 %2755, %v2598_v24  }
 0xedf   :  { %2426 = vperm.xlu1 %2755, %v2602_v4  }
 0xf35   :  { %v1644_v32 = vpop.permute.xlu1 %1643 }
 0xf36   :  { %v1646_v7 = vadd.f32 %v1644_v32, %v3245_v8 }
 0xf38   :  { %v1653_v10 = vmul.f32 %v3478_v30, %v1646_v7  ;;  %v1759_v47 = vpop.permute.xlu0 %1758 }
 0xf39   :  { %2670 = vmatmul.mubr.msk.f32.vlgmr.msra.gmra.mxu1 %vm83_vm0, %v1759_v47 }
 0xf3a   :  { %2684 = vmatpush3.msra.mxu1 %v3502_v50  ;;  %1661 = vrot.lane.b32.xlu1 %v1653_v10, %s2853_s16  ;;  %v1743_v8 = vmul.f32 %v1741_v46, %v1653_v10 }
 0xf3b   :  { %2685 = vmatprep.subr.mxu1 %v2852_v3  ;;  %2691 = vmatprep.mubr.msk.f32.mxu1 %vm2856_vm2, %v2852_v3 }
 0xf3c   :  { %2686 = vmatpush3.msra.mxu1 %v3507_v44  ;;  %v1955_v30 = vpop.permute.xlu0 %1954  ;;  %v1842_v38 = vadd.f32 %v1841_v51, %v1743_v8  ;;  %v2603_v8 = vld [vmem:[%s3724_s12] ss:$0 sm:$0xff] }
 0xf3d   :  { %2687 = vmatprep.subr.mxu1 %v2852_v3 }
 0xf3e   :  { %2688 = vmatpush3.msra.mxu1 %v3515_v62  ;;  %1856 = vrot.lane.b32.xlu1 %v3481_v52, %s2853_s16 }
 0xf3f   :  { %2689 = vmatprep.subr.mxu1 %v2852_v3 }
 0xf40   :  { %2690 = vmatpush3.msra.mxu1 %v3531_v5 }
 0xf41   :  { %2692 = vmatmul.mubr.msk.f32.vlgmr.msra.gmra.mxu1 %vm83_vm0, %v1955_v30  ;;  %2705 = vmatprep.subr.mxu1 %v2852_v3 }
 0xf42   :  { %v1937_v34 = vpop.permute.xlu1 %1936  ;;  %2706 = vmatpush3.msra.mxu1 %v3502_v50  ;;  %2713 = vmatprep.mubr.msk.f32.mxu1 %vm2856_vm2, %v2852_v3 }
 0xf43   :  { %v1939_v39 = vmul.f32 %v1937_v34, %v3481_v52  ;;  %2707 = vmatprep.subr.mxu1 %v2852_v3 }
 0xf44   :  { %2708 = vmatpush3.msra.mxu1 %v3507_v44 }
 0xf45   :  { %v1940_v54 = vadd.f32 %v1939_v39, %v1842_v38  ;;  %2709 = vmatprep.subr.mxu1 %v2852_v3 }
 0xf46   :  { %v2040_v55 = vpop.permute.xlu1 %2039  ;;  %2710 = vmatpush3.msra.mxu1 %v3515_v62 }
 0xf47   :  { %v2042_v56 = vadd.f32 %v2040_v55, %v3390_v33  ;;  %v2038_v57 = vadd.f32 %v2037_v53, %v1940_v54  ;;  %2711 = vmatprep.subr.mxu1 %v2852_v3 }
 0xf48   :  { %2712 = vmatpush3.msra.mxu1 %v3531_v5 }
 0xf49   :  { %v2050_v52 = vmul.f32 %v3526_v2, %v2042_v56  ;;  %2727 = vmatprep.subr.mxu1 %v2852_v3 }
 0xf4a   :  { %v2133_v58 = vpop.permute.xlu1 %2132 }
 0xf4b   :  { %2052 = vrot.lane.b32.xlu1 %v2050_v52, %s2853_s16  ;;  %v2135_v33 = vmul.f32 %v2133_v58, %v2050_v52 }
 0xf4d   :  { %v2136_v40 = vadd.f32 %v2135_v33, %v2038_v57 }
 0xf4e   :  { %v2244_v37 = vpop.permute.xlu1 %2243 }
 0xf4f   :  { %v2246_v60 = vmul.f32 %v2244_v37, %v2238_v59 }
 0xf51   :  { %2248 = vrot.lane.b32.xlu1 %v2246_v60, %s2853_s16 }
 0xf52   :  { %v2138_v61 = vpop.permute.xlu1 %2137 }
 0xf53   :  { %v2140_v14 = vadd.f32 %v2138_v61, %v3422_v36 }
 0xf55   :  { %v2148_v42 = vmul.f32 %v2146_v26, %v2140_v14 }
 0xf56   :  { %v2329_v48 = vpop.permute.xlu1 %2328 }
 0xf57   :  { %v2233_v63 = vmul.f32 %v2231_v27, %v2148_v42  ;;  %2150 = vrot.lane.b32.xlu0 %v2148_v42, %s2853_s16  ;;  %v2331_v1 = vmul.f32 %v2329_v48, %v2246_v60 }
 0xf59   :  { %v2234_v0 = vadd.f32 %v2233_v63, %v2136_v40 }
 0xf5a   :  { %v2427_v15 = vpop.permute.xlu1 %2426 }
 0xf5b   :  { %v2332_v41 = vadd.f32 %v2331_v1, %v2234_v0  ;;  %v2429_v2 = vmul.f32 %v2427_v15, %v2344_v45  ;;  %2346 = vrot.lane.b32.xlu0 %v2344_v45, %s2853_s16 }
 0xf5d   :  { %v2430_v35 = vadd.f32 %v2429_v2, %v2332_v41 }
 0xf5f   :  { %2443 = vrot.lane.b32.xlu1 %v2430_v35, %s2853_s16 }
 0xfac   :  { %v1662_v36 = vpop.permute.xlu1 %1661 }
 0xfad   :  { %2659 = vmatmul.mubr.msk.f32.vlgmr.msra.gmra.mxu0 %vm83_vm0, %v1662_v36 }
 0xfae   :  { %2673 = vmatpush3.msra.mxu0 %v3502_v50  ;;  %2680 = vmatprep.mubr.msk.f32.mxu0 %vm2856_vm2, %v2852_v3 }
 0xfaf   :  { %2674 = vmatprep.subr.mxu0 %v2852_v3 }
 0xfb0   :  { %2675 = vmatpush3.msra.mxu0 %v3507_v44  ;;  %v1857_v6 = vpop.permute.xlu1 %1856 }
 0xfb1   :  { %2676 = vmatprep.subr.mxu0 %v2852_v3 }
 0xfb2   :  { %2677 = vmatpush3.msra.mxu0 %v3515_v62 }
 0xfb3   :  { %2678 = vmatprep.subr.mxu0 %v2852_v3 }
 0xfb4   :  { %2679 = vmatpush3.msra.mxu0 %v3531_v5 }
 0xfb5   :  { %2681 = vmatmul.mubr.msk.f32.vlgmr.msra.gmra.mxu0 %vm83_vm0, %v1857_v6  ;;  %2694 = vmatprep.subr.mxu0 %v2852_v3 }
 0xfb6   :  { %2695 = vmatpush3.msra.mxu0 %v3502_v50  ;;  %2702 = vmatprep.mubr.msk.f32.mxu0 %vm2856_vm2, %v2852_v3 }
 0xfb7   :  { %2696 = vmatprep.subr.mxu0 %v2852_v3 }
 0xfb8   :  { %2697 = vmatpush3.msra.mxu0 %v3507_v44 }
 0xfb9   :  { %2698 = vmatprep.subr.mxu0 %v2852_v3 }
 0xfba   :  { %2699 = vmatpush3.msra.mxu0 %v3515_v62 }
 0xfbb   :  { %2700 = vmatprep.subr.mxu0 %v2852_v3 }
 0xfbc   :  { %2701 = vmatpush3.msra.mxu0 %v3531_v5 }
 0xfbd   :  { %2716 = vmatprep.subr.mxu0 %v2852_v3  ;;  %v2053_v43 = vpop.permute.xlu1 %2052 }
 0xfbe   :  { %2703 = vmatmul.mubr.msk.f32.vlgmr.msra.gmra.mxu0 %vm83_vm0, %v2053_v43 }
 0xfbf   :  { %2717 = vmatpush3.msra.mxu0 %v3502_v50  ;;  %2724 = vmatprep.mubr.msk.f32.mxu0 %vm2856_vm2, %v2852_v3 }
 0xfc0   :  { %2718 = vmatprep.subr.mxu0 %v2852_v3 }
 0xfc1   :  { %2719 = vmatpush3.msra.mxu0 %v3507_v44 }
 0xfc2   :  { %2720 = vmatprep.subr.mxu0 %v2852_v3 }
 0xfc3   :  { %2721 = vmatpush3.msra.mxu0 %v3515_v62  ;;  %v2249_v9 = vpop.permute.xlu1 %2248 }
 0xfc4   :  { %2722 = vmatprep.subr.mxu0 %v2852_v3 }
 0xfc5   :  { %2723 = vmatpush3.msra.mxu0 %v3531_v5 }
 0xfc6   :  { %2725 = vmatmul.mubr.msk.f32.vlgmr.msra.gmra.mxu0 %vm83_vm0, %v2249_v9  ;;  %2738 = vmatprep.subr.mxu0 %v2852_v3 }
 0xfc7   :  { %2739 = vmatpush3.msra.mxu0 %v2434_v12  ;;  %2746 = vmatprep.mubr.msk.f32.mxu0 %vm2856_vm2, %v2852_v3 }
 0xfc8   :  { %2740 = vmatprep.subr.mxu0 %v2852_v3 }
 0xfc9   :  { %v2151_v17 = vpop.permute.xlu0 %2150  ;;  %2741 = vmatpush3.msra.mxu0 %v2433_v31 }
 0xfca   :  { %2714 = vmatmul.mubr.msk.f32.vlgmr.msra.gmra.mxu1 %vm83_vm0, %v2151_v17  ;;  %2742 = vmatprep.subr.mxu0 %v2852_v3 }
 0xfcb   :  { %2728 = vmatpush3.msra.mxu1 %v3502_v50  ;;  %2743 = vmatpush3.msra.mxu0 %v2432_v16 }
 0xfcc   :  { %2729 = vmatprep.subr.mxu1 %v2852_v3  ;;  %2735 = vmatprep.mubr.msk.f32.mxu1 %vm2856_vm2, %v2852_v3 }
 0xfcd   :  { %2730 = vmatpush3.msra.mxu1 %v3507_v44  ;;  %2744 = vmatprep.subr.mxu0 %v2852_v3  ;;  %v2347_v50 = vpop.permute.xlu0 %2346  ;;  %v2573_v44 = vld [vmem:[%s3722_s10] ss:$0 sm:$0xff] }
 0xfce   :  { %2731 = vmatprep.subr.mxu1 %v2852_v3  ;;  %2745 = vmatpush3.msra.mxu0 %v2431_v18 }
 0xfcf   :  { %2732 = vmatpush3.msra.mxu1 %v3515_v62 }
 0xfd0   :  { %2733 = vmatprep.subr.mxu1 %v2852_v3 }
 0xfd1   :  { %2734 = vmatpush3.msra.mxu1 %v3531_v5  ;;  %v2444_v19 = vpop.permute.xlu1 %2443 }
 0xfd2   :  { %2736 = vmatmul.mubr.msk.f32.vlgmr.msra.gmra.mxu1 %vm83_vm0, %v2347_v50  ;;  %2747 = vmatmul.mubr.msk.f32.vlgmr.msra.gmra.mxu0 %vm83_vm0, %v2444_v19 }
 0xff9   :  { %v1828_v20 = vpop.f32.mrf.mxu1 }
 0xffa   :  { %v1829_v21 = vadd.f32 %v2573_v44, %v1828_v20 }
 0xffb   :  { %v2671_v22 = vpop.f32.mrf.mxu1 }
 0xffc   :  { %2577 = vst.msk [vmem:[%s3723_s13 + $0x4] sm:$0xf] %vm1735_vm3, %v1829_v21 }
0x1001   :  { %v2024_v3 = vpop.f32.mrf.mxu1 }
0x1002   :  { %v2025_v62 = vadd.f32 %v2573_v44, %v2024_v3 }
0x1003   :  { %v2693_v5 = vpop.f32.mrf.mxu1 }
0x1004   :  { %2585 = vst.msk [vmem:[%s3723_s13 + $0xc] sm:$0xf] %vm1735_vm3, %v2025_v62 }
0x106d   :  { %v1731_v11 = vpop.f32.mrf.mxu0 }
0x106e   :  { %v1732_v23 = vadd.f32 %v2573_v44, %v1731_v11 }
0x106f   :  { %v2660_v24 = vpop.f32.mrf.mxu0 }
0x1070   :  { %1736 = vst.msk [vmem:[%s3723_s13] sm:$0xf] %vm1735_vm3, %v1732_v23 }
0x1075   :  { %v1926_v4 = vpop.f32.mrf.mxu0 }
0x1076   :  { %v1927_v25 = vadd.f32 %v2573_v44, %v1926_v4 }
0x1077   :  { %v2682_v26 = vpop.f32.mrf.mxu0 }
0x1078   :  { %2581 = vst.msk [vmem:[%s3723_s13 + $0x8] sm:$0xf] %vm1735_vm3, %v1927_v25 }
0x107e   :  { %v2122_v27 = vpop.f32.mrf.mxu0 }
0x107f   :  { %v2123_v28 = vadd.f32 %v2573_v44, %v2122_v27 }
0x1080   :  { %v2704_v29 = vpop.f32.mrf.mxu0 }
0x1081   :  { %2589 = vst.msk [vmem:[%s3723_s13 + $0x10] sm:$0xf] %vm1735_vm3, %v2123_v28 }
0x1086   :  { %v2318_v46 = vpop.f32.mrf.mxu0 }
0x1087   :  { %v2319_v13 = vadd.f32 %v2573_v44, %v2318_v46 }
0x1088   :  { %v2726_v32 = vpop.f32.mrf.mxu0 }
0x1089   :  { %2597 = vst.msk [vmem:[%s3723_s13 + $0x18] sm:$0xf] %vm1735_vm3, %v2319_v13 }
0x108a   :  { %v2220_v7 = vpop.f32.mrf.mxu1 }
0x108b   :  { %v2221_v10 = vadd.f32 %v2573_v44, %v2220_v7 }
0x108c   :  { %v2715_v47 = vpop.f32.mrf.mxu1 }
0x108d   :  { %2593 = vst.msk [vmem:[%s3723_s13 + $0x14] sm:$0xf] %vm1735_vm3, %v2221_v10 }
0x1092   :  { %v2416_v30 = vpop.f32.mrf.mxu1  ;;  %v2513_v51 = vpop.f32.mrf.mxu0 }
0x1093   :  { %v2417_v34 = vadd.f32 %v2573_v44, %v2416_v30  ;;  %v2514_v38 = vadd.f32 %v2603_v8, %v2513_v51 }
0x1094   :  { %v2737_v39 = vpop.f32.mrf.mxu1  ;;  %v2748_v53 = vpop.f32.mrf.mxu0 }
0x1095   :  { %2601 = vst.msk [vmem:[%s3723_s13 + $0x1c] sm:$0xf] %vm1735_vm3, %v2417_v34  ;;  %2517 = vst.msk [vmem:[%s3725_s14] sm:$0xf] %vm1735_vm3, %v2514_v38 }

</bundles_post_ra>
